<compile_context>
chip_gen: v7x
topology: tpu7x:2x2x1
jax: 0.10.0
libtpu: 0.0.40
codegen_flags: <defaults>
</compile_context>

<pallas_src>
import functools
import math

import jax
import jax.numpy as jnp
from jax import lax
from jax.experimental import pallas as pl
from jax.experimental.pallas import tpu as pltpu


# ---------------------------------------------------------------------------
# Fused inverted-residual block kernel
# ---------------------------------------------------------------------------

def _blk_kernel(*refs, H, W, Wp, H_out, W_out, stride, shortcut, B, rb, nb):
    """B images per grid step: expand -> depthwise -> project (+shortcut), all in VMEM."""
    if shortcut == "conv":
        (x_ref, w1_ref, b1_ref, wd_ref, bd_ref, w2_ref, bp_ref, ws_ref,
         o_ref, e_ref) = refs
    else:
        (x_ref, w1_ref, b1_ref, wd_ref, bd_ref, w2_ref, bp_ref,
         o_ref, e_ref) = refs
        ws_ref = None

    Cin = x_ref.shape[-1]
    Ce = w1_ref.shape[-1]
    Cout = w2_ref.shape[-1]
    Ho, Wo = H_out, W_out

    # ---- halo maintenance: zero only the rows / pad columns the 3x3 taps read ------
    # (Interior rows/cols are fully overwritten by the expand stores below.)
    e_ref[:, 0:1] = jnp.zeros((B, 1, Wp, Ce), jnp.float32)                 # top halo row
    if stride == 1:
        e_ref[:, H + 1:H + 2] = jnp.zeros((B, 1, Wp, Ce), jnp.float32)     # bottom halo
    e_ref[:, 1:H + 1, W:Wp, :] = jnp.zeros((B, H, Wp - W, Ce), jnp.float32)  # W halo cols

    # ---- stage 1: 1x1 expand (BN scale pre-folded into w1) + ReLU6, row-banded ------
    w1 = w1_ref[...]                                        # (Cin, Ce) bf16
    b1 = b1_ref[...]                                        # (1, Ce)  f32

    def _expand(i, carry):
        hr0 = i * rb
        xb = x_ref[:, pl.ds(hr0, rb)].reshape(B * rb * W, Cin)
        h = jnp.dot(xb, w1, preferred_element_type=jnp.float32)
        h = jnp.clip(h + b1, 0.0, 6.0)
        e_ref[:, pl.ds(1 + hr0, rb), 0:W, :] = h.reshape(B, rb, W, Ce)
        return carry

    lax.fori_loop(0, H // rb, _expand, 0, unroll=True)

    # ---- stages 2+3: 3x3 depthwise (+ReLU6) then 1x1 project (+shortcut), banded ----
    wd = wd_ref[...]                                        # (9, Ce) f32, BN pre-folded
    wtap = [wd[k].reshape(1, 1, Ce) for k in range(9)]      # hoisted broadcasts
    bd = bd_ref[...].reshape(1, 1, Ce)
    w2 = w2_ref[...]                                        # (Ce, Cout) bf16
    bp = bp_ref[...]                                        # (1, Cout) f32 (b2 [+ bs])
    ws = ws_ref[...] if shortcut == "conv" else None

    def _band(i, carry):
        r0 = i * nb
        acc = None
        for kh in range(3):
            if stride == 1:
                rows = e_ref[:, pl.ds(r0 + kh, nb)]
            else:
                # scratch rows: [0]=zero | [1, 1+Ho)=odd h rows | [1+Ho, 1+H)=even rows
                start = (r0, 1 + Ho + r0, 1 + r0)[kh]
                rows = e_ref[:, pl.ds(start, nb)]
            rows = rows.reshape(B * nb, Wp, Ce)             # (rows, sublane=W, lane=Ce)
            for kw in range(3):
                if stride == 1:
                    if kw == 1:
                        tap = rows[:, 0:Wo, :]
                    else:   # left/right neighbour via roll through the zero halo cols
                        tap = pltpu.roll(rows, shift=(1 - kw) % Wp, axis=1)[:, 0:Wo, :]
                else:       # stride == 2: columns already de-interleaved [even | odd]
                    if kw == 1:                            # even input columns
                        tap = rows[:, 0:Wo, :]
                    elif kw == 2:                          # odd input columns
                        tap = rows[:, Wo:2 * Wo, :]
                    else:                                  # odd cols shifted right by 1
                        tap = pltpu.roll(rows[:, Wo:Wp, :], shift=1, axis=1)[:, 0:Wo, :]
                term = tap * wtap[kh * 3 + kw]
                acc = term if acc is None else acc + term   # init with first tap product
        d2 = (jnp.clip(acc + bd, 0.0, 6.0)
              .reshape(B * nb * Wo, Ce).astype(jnp.bfloat16))

        out = jnp.dot(d2, w2, preferred_element_type=jnp.float32) + bp
        if shortcut != "none":                              # stride == 1, so W == Wo
            xb = x_ref[:, pl.ds(r0, nb)].reshape(B * nb * W, Cin)
            if shortcut == "identity":
                out = out + xb.astype(jnp.float32)
            else:                                           # "conv" 1x1 shortcut (folded)
                out = out + jnp.dot(xb, ws, preferred_element_type=jnp.float32)
        o_ref[:, pl.ds(r0, nb)] = out.reshape(B, nb, Wo, Cout).astype(o_ref.dtype)
        return carry

    lax.fori_loop(0, H_out // nb, _band, 0, unroll=True)


def _pick_batch_block(N, H, W, Wp, Ce, Cin, Cout, H_out, W_out):
    """Images per grid step: enough matmul rows for the MXU, under a VMEM budget."""
    budget = 12 * 1024 * 1024
    best = 1
    for b in range(1, N + 1):
        if N % b:
            continue
        vmem = b * ((H + 2) * Wp * Ce * 4            # f32 expanded-map scratch
                    + 2 * H * W * Cin * 2            # double-buffered bf16 input block
                    + 2 * H_out * W_out * Cout * 4)  # double-buffered f32 output block
        if vmem > budget:
            break
        best = b
        if b * H_out * W_out >= 256:
            break
    return best


def fold_block_params(p):
    """Fold eval-mode BatchNorm (scale) into the conv weights; fold in f32, then cast."""
    f = {
        "w1": (p["w1"] * p["s1"]).astype(jnp.bfloat16),   # (Cin, Ce)
        "b1": p["b1"],
        "wd": (p["wd"] * p["sd"]).astype(jnp.float32),    # (9, Ce), depthwise stays f32
        "bd": p["bd"],
        "w2": (p["w2"] * p["s2"]).astype(jnp.bfloat16),   # (Ce, Cout)
        "b2": p["b2"],
    }
    if "ws" in p:
        f["ws"] = (p["ws"] * p["ss"]).astype(jnp.bfloat16)
        f["bs"] = p["bs"]
    return f


def fused_inverted_residual(x_nhwc, fp, *, stride, out_dtype=jnp.float32):
    """x_nhwc: (N, H, W, Cin) bf16 (already layout-permuted for stride=2)."""
    N, H, W, Cin = x_nhwc.shape
    Ce = fp["w1"].shape[1]
    Cout = fp["w2"].shape[1]
    assert stride in (1, 2), "kernel covers the MobileNetV2 strides (1, 2)"
    assert W % 8 == 0, "W must be a multiple of 8 (sublane alignment)"
    if stride == 2:
        assert H % 2 == 0 and W % 16 == 0, "stride-2 path needs even H and W % 16 == 0"

    H_out, W_out = H // stride, W // stride
    Wp = W + 8                       # >= W+1 zero columns feed the roll-based W halo

    if stride != 1:
        shortcut = "none"
    elif Cin == Cout:
        shortcut = "identity"
    else:
        shortcut = "conv"

    rb = 8 if H % 8 == 0 else H              # expand band (input rows)
    nb = 8 if H_out % 8 == 0 else H_out      # depthwise/project band (output rows)
    B_blk = _pick_batch_block(N, H, W, Wp, Ce, Cin, Cout, H_out, W_out)

    bp = fp["b2"] + fp["bs"] if shortcut == "conv" else fp["b2"]

    args = [x_nhwc, fp["w1"], fp["b1"], fp["wd"], fp["bd"], fp["w2"], bp]
    in_specs = [
        pl.BlockSpec((B_blk, H, W, Cin), lambda b: (b, 0, 0, 0)),
        pl.BlockSpec((Cin, Ce), lambda b: (0, 0)),
        pl.BlockSpec((1, Ce), lambda b: (0, 0)),
        pl.BlockSpec((9, Ce), lambda b: (0, 0)),
        pl.BlockSpec((1, Ce), lambda b: (0, 0)),
        pl.BlockSpec((Ce, Cout), lambda b: (0, 0)),
        pl.BlockSpec((1, Cout), lambda b: (0, 0)),
    ]
    if shortcut == "conv":
        args.append(fp["ws"])
        in_specs.append(pl.BlockSpec((Cin, Cout), lambda b: (0, 0)))

    flops = (2 * N * H * W * Cin * Ce                 # expand
             + 2 * 9 * N * H_out * W_out * Ce         # depthwise (stride folded in)
             + 2 * N * H_out * W_out * Ce * Cout)     # project
    if shortcut == "conv":
        flops += 2 * N * H * W * Cin * Cout
    bytes_accessed = (N * H_out * W_out * Cout * jnp.dtype(out_dtype).itemsize
                      + sum(int(a.size) * a.dtype.itemsize for a in args))

    kernel = functools.partial(
        _blk_kernel, H=H, W=W, Wp=Wp, H_out=H_out, W_out=W_out,
        stride=stride, shortcut=shortcut, B=B_blk, rb=rb, nb=nb)

    return pl.pallas_call(
        kernel,
        out_shape=jax.ShapeDtypeStruct((N, H_out, W_out, Cout), out_dtype),
        grid=(N // B_blk,),
        in_specs=in_specs,
        out_specs=pl.BlockSpec((B_blk, H_out, W_out, Cout), lambda b: (b, 0, 0, 0)),
        scratch_shapes=[pltpu.VMEM((B_blk, H + 2, Wp, Ce), jnp.float32)],
        compiler_params=pltpu.CompilerParams(
            dimension_semantics=("parallel",),
            vmem_limit_bytes=48 * 1024 * 1024),
        cost_estimate=pl.CostEstimate(flops=int(flops), transcendentals=0,
                                      bytes_accessed=int(bytes_accessed)),
    )(*args)


def blk_stride_forward(params, x_nchw, stride):
    """Forward of the PyTorch `blk_stride` module (eval-mode BN).  NCHW f32 in / out."""
    fp = fold_block_params(params)
    # Cast to bf16 BEFORE the layout transpose (halves transpose HBM traffic).
    x = jnp.transpose(x_nchw.astype(jnp.bfloat16), (0, 2, 3, 1))   # NHWC bf16
    if stride == 2:
        # Fold the stride into the layout: rows -> [odd | even], cols -> [even | odd].
        # The 1x1 expand is pointwise, so the expanded map inherits the permutation and
        # the in-kernel depthwise taps become aligned slices over W_out columns.
        x = jnp.concatenate([x[:, 1::2], x[:, 0::2]], axis=1)
        x = jnp.concatenate([x[:, :, 0::2], x[:, :, 1::2]], axis=2)
    y = fused_inverted_residual(x, fp, stride=stride, out_dtype=jnp.float32)
    return jnp.transpose(y, (0, 3, 1, 2))


# ---------------------------------------------------------------------------
# Parameter init (deterministic, synthetic; BN kept as per-channel scale/bias)
# ---------------------------------------------------------------------------

def _fold_bn(key, c):
    k1, k2, k3, k4 = jax.random.split(key, 4)
    gamma = 1.0 + 0.1 * jax.random.normal(k1, (c,), jnp.float32)
    beta = 0.1 * jax.random.normal(k2, (c,), jnp.float32)
    mean = 0.1 * jax.random.normal(k3, (c,), jnp.float32)
    var = 1.0 + 0.1 * jax.random.uniform(k4, (c,), jnp.float32)
    scale = gamma * lax.rsqrt(var + 1e-5)
    bias = beta - mean * scale
    return scale.reshape(1, c), bias.reshape(1, c)


def init_block_params(key, cin, cout, t, stride):
    ce = cin * t
    ks = jax.random.split(key, 8)
    p = {}
    p["w1"] = jax.random.normal(ks[0], (cin, ce), jnp.float32) / math.sqrt(cin)
    p["s1"], p["b1"] = _fold_bn(ks[1], ce)
    p["wd"] = jax.random.normal(ks[2], (9, ce), jnp.float32) / 3.0
    p["sd"], p["bd"] = _fold_bn(ks[3], ce)
    p["w2"] = jax.random.normal(ks[4], (ce, cout), jnp.float32) / math.sqrt(ce)
    p["s2"], p["b2"] = _fold_bn(ks[5], cout)
    if stride == 1 and cin != cout:   # same condition as the PyTorch module
        p["ws"] = jax.random.normal(ks[6], (cin, cout), jnp.float32) / math.sqrt(cin)
        p["ss"], p["bs"] = _fold_bn(ks[7], cout)
    return p


# ---------------------------------------------------------------------------
# Pure-JAX reference (same folded weights / bf16 casts; standard conv indexing)
# ---------------------------------------------------------------------------

def blk_stride_reference(params, x_nchw, stride):
    fp = fold_block_params(params)
    x = jnp.transpose(x_nchw, (0, 2, 3, 1)).astype(jnp.bfloat16).astype(jnp.float32)
    N, H, W, Cin = x.shape
    Ce = fp["w1"].shape[1]
    Cout = fp["w2"].shape[1]

    h = jnp.einsum("nhwc,ce->nhwe", x, fp["w1"].astype(jnp.float32))
    h = jnp.clip(h + fp["b1"].reshape(1, 1, 1, -1), 0.0, 6.0)

    hp = jnp.pad(h, ((0, 0), (1, 1), (1, 1), (0, 0)))
    H_out = (H - 1) // stride + 1
    W_out = (W - 1) // stride + 1
    acc = jnp.zeros((N, H_out, W_out, Ce), jnp.float32)
    for kh in range(3):
        for kw in range(3):
            sl = hp[:, kh:kh + stride * (H_out - 1) + 1:stride,
                    kw:kw + stride * (W_out - 1) + 1:stride, :]
            acc = acc + sl * fp["wd"][kh * 3 + kw].reshape(1, 1, 1, -1)
    d = jnp.clip(acc + fp["bd"].reshape(1, 1, 1, -1), 0.0, 6.0)
    d = d.astype(jnp.bfloat16).astype(jnp.float32)   # kernel casts to bf16 before project

    out = jnp.einsum("nhwc,co->nhwo", d, fp["w2"].astype(jnp.float32))
    out = out + fp["b2"].reshape(1, 1, 1, -1)
    if stride == 1:
        if Cin == Cout:
            out = out + x
        else:
            sc = jnp.einsum("nhwc,co->nhwo", x, fp["ws"].astype(jnp.float32))
            out = out + sc + fp["bs"].reshape(1, 1, 1, -1)
    return jnp.transpose(out, (0, 3, 1, 2))


# ---------------------------------------------------------------------------

if __name__ == "__main__":
    key = jax.random.PRNGKey(0)
    configs = [
        dict(Cin=32, Cout=32, t=4, stride=1),   # identity-shortcut path
        dict(Cin=16, Cout=32, t=6, stride=1),   # 1x1-conv-shortcut path
        dict(Cin=32, Cout=64, t=6, stride=2),   # strided path (no shortcut)
    ]
    N, H, W = 2, 16, 16

    for i, cfg in enumerate(configs):
        kp, kx, key = jax.random.split(key, 3)
        params = init_block_params(kp, cfg["Cin"], cfg["Cout"], cfg["t"], cfg["stride"])
        x = jax.random.normal(kx, (N, cfg["Cin"], H, W), jnp.float32)

        fwd = jax.jit(functools.partial(blk_stride_forward, params, stride=cfg["stride"]))
        out = jax.block_until_ready(fwd(x))

        H_out = H // cfg["stride"]
        W_out = W // cfg["stride"]
        assert out.shape == (N, cfg["Cout"], H_out, W_out)
        assert bool(jnp.all(jnp.isfinite(out)))

        ref = blk_stride_reference(params, x, cfg["stride"])
        err = float(jnp.max(jnp.abs(out - ref)))
        assert bool(jnp.allclose(out, ref, rtol=5e-2, atol=5e-2)), (
            f"config {i}: max abs err {err}")

    print("KERNEL_OK")
</pallas_src>

<mosaic_0001>
module attributes {stable_mosaic.version = 11 : i64} {
  func.func @_blk_kernel(%arg0: i32, %arg1: memref<1x16x16x32xbf16, #tpu.memory_space<vmem>>, %arg2: memref<32x128xbf16, #tpu.memory_space<vmem>>, %arg3: memref<1x128xf32, #tpu.memory_space<vmem>>, %arg4: memref<9x128xf32, #tpu.memory_space<vmem>>, %arg5: memref<1x128xf32, #tpu.memory_space<vmem>>, %arg6: memref<128x32xbf16, #tpu.memory_space<vmem>>, %arg7: memref<1x32xf32, #tpu.memory_space<vmem>>, %arg8: memref<1x16x16x32xf32, #tpu.memory_space<vmem>>, %arg9: memref<1x18x24x128xf32, #tpu.memory_space<vmem>>) attributes {dimension_semantics = [#tpu.dimension_semantics<parallel>], iteration_bounds = array<i64: 2>, scalar_prefetch = 0 : i64, scratch_operands = 1 : i64, tpu.core_type = #tpu.core_type<tc>, window_params = [{transform_indices = @transform_0, window_bounds = array<i64: 1, 16, 16, 32>}, {pipeline_mode = #tpu.pipeline_mode<synchronous>, transform_indices = @transform_1, window_bounds = array<i64: 32, 128>}, {pipeline_mode = #tpu.pipeline_mode<synchronous>, transform_indices = @transform_2, window_bounds = array<i64: 1, 128>}, {pipeline_mode = #tpu.pipeline_mode<synchronous>, transform_indices = @transform_3, window_bounds = array<i64: 9, 128>}, {pipeline_mode = #tpu.pipeline_mode<synchronous>, transform_indices = @transform_4, window_bounds = array<i64: 1, 128>}, {pipeline_mode = #tpu.pipeline_mode<synchronous>, transform_indices = @transform_5, window_bounds = array<i64: 128, 32>}, {pipeline_mode = #tpu.pipeline_mode<synchronous>, transform_indices = @transform_6, window_bounds = array<i64: 1, 32>}, {transform_indices = @transform_7, window_bounds = array<i64: 1, 16, 16, 32>}]} {
    %cst = arith.constant 0.000000e+00 : f32
    %0 = vector.broadcast %cst : f32 to vector<1x1x24x128xf32>
    %c0 = arith.constant 0 : index
    %c0_0 = arith.constant 0 : index
    %c0_1 = arith.constant 0 : index
    %c0_2 = arith.constant 0 : index
    %1 = vector.load %arg9[%c0, %c0_0, %c0_1, %c0_2] : memref<1x18x24x128xf32, #tpu.memory_space<vmem>>, vector<1x1x24x128xf32>
    tpu.vector_store %arg9[%c0, %c0_0, %c0_1, %c0_2], %0 {strides = array<i32>} : memref<1x18x24x128xf32, #tpu.memory_space<vmem>>, vector<1x1x24x128xf32>,
    %cst_3 = arith.constant 0.000000e+00 : f32
    %2 = vector.broadcast %cst_3 : f32 to vector<1x1x24x128xf32>
    %c0_4 = arith.constant 0 : index
    %c17 = arith.constant 17 : index
    %c0_5 = arith.constant 0 : index
    %c0_6 = arith.constant 0 : index
    %3 = vector.load %arg9[%c0_4, %c17, %c0_5, %c0_6] : memref<1x18x24x128xf32, #tpu.memory_space<vmem>>, vector<1x1x24x128xf32>
    tpu.vector_store %arg9[%c0_4, %c17, %c0_5, %c0_6], %2 {strides = array<i32>} : memref<1x18x24x128xf32, #tpu.memory_space<vmem>>, vector<1x1x24x128xf32>,
    %cst_7 = arith.constant 0.000000e+00 : f32
    %4 = vector.broadcast %cst_7 : f32 to vector<1x16x8x128xf32>
    %c0_8 = arith.constant 0 : index
    %c1 = arith.constant 1 : index
    %c16 = arith.constant 16 : index
    %c0_9 = arith.constant 0 : index
    %5 = vector.load %arg9[%c0_8, %c1, %c16, %c0_9] : memref<1x18x24x128xf32, #tpu.memory_space<vmem>>, vector<1x16x8x128xf32>
    tpu.vector_store %arg9[%c0_8, %c1, %c16, %c0_9], %4 {strides = array<i32>} : memref<1x18x24x128xf32, #tpu.memory_space<vmem>>, vector<1x16x8x128xf32>,
    %c0_10 = arith.constant 0 : index
    %c0_11 = arith.constant 0 : index
    %6 = vector.load %arg2[%c0_10, %c0_11] : memref<32x128xbf16, #tpu.memory_space<vmem>>, vector<32x128xbf16>
    %c0_12 = arith.constant 0 : index
    %c0_13 = arith.constant 0 : index
    %7 = vector.load %arg3[%c0_12, %c0_13] : memref<1x128xf32, #tpu.memory_space<vmem>>, vector<1x128xf32>
    %c0_i32 = arith.constant 0 : i32
    %c8_i32 = arith.constant 8 : i32
    %8 = arith.muli %c0_i32, %c8_i32 : i32
    %c0_14 = arith.constant 0 : index
    %9 = arith.index_cast %8 : i32 to index
    %c0_15 = arith.constant 0 : index
    %c0_16 = arith.constant 0 : index
    %10 = vector.load %arg1[%c0_14, %9, %c0_15, %c0_16] : memref<1x16x16x32xbf16, #tpu.memory_space<vmem>>, vector<1x8x16x32xbf16>
    %11 = vector.shape_cast %10 : vector<1x8x16x32xbf16> to vector<128x32xbf16>
    %cst_17 = arith.constant dense<0.000000e+00> : vector<128x128xf32>
    %12 = tpu.matmul %11, %6, %cst_17 {dimension_numbers = #tpu.dot_dimension_numbers<[1], [0], [0], [1], [0, 0, 1, 1], [], []>} : vector<128x32xbf16>, vector<32x128xbf16>, vector<128x128xf32> -> vector<128x128xf32>
    %13 = vector.broadcast %7 : vector<1x128xf32> to vector<128x128xf32>
    %14 = arith.addf %12, %13 : vector<128x128xf32>
    %cst_18 = arith.constant 0.000000e+00 : f32
    %cst_19 = arith.constant 6.000000e+00 : f32
    %15 = vector.broadcast %cst_18 : f32 to vector<128x128xf32>
    %16 = arith.maximumf %15, %14 : vector<128x128xf32>
    %17 = vector.broadcast %cst_19 : f32 to vector<128x128xf32>
    %18 = arith.minimumf %17, %16 : vector<128x128xf32>
    %19 = vector.shape_cast %18 : vector<128x128xf32> to vector<1x8x16x128xf32>
    %c1_i32 = arith.constant 1 : i32
    %20 = arith.addi %c1_i32, %8 : i32
    %c0_20 = arith.constant 0 : index
    %21 = arith.index_cast %20 : i32 to index
    %c0_21 = arith.constant 0 : index
    %c0_22 = arith.constant 0 : index
    %22 = vector.load %arg9[%c0_20, %21, %c0_21, %c0_22] : memref<1x18x24x128xf32, #tpu.memory_space<vmem>>, vector<1x8x16x128xf32>
    tpu.vector_store %arg9[%c0_20, %21, %c0_21, %c0_22], %19 {strides = array<i32>} : memref<1x18x24x128xf32, #tpu.memory_space<vmem>>, vector<1x8x16x128xf32>,
    %c1_i32_23 = arith.constant 1 : i32
    %c8_i32_24 = arith.constant 8 : i32
    %23 = arith.muli %c1_i32_23, %c8_i32_24 : i32
    %c0_25 = arith.constant 0 : index
    %24 = arith.index_cast %23 : i32 to index
    %c0_26 = arith.constant 0 : index
    %c0_27 = arith.constant 0 : index
    %25 = vector.load %arg1[%c0_25, %24, %c0_26, %c0_27] : memref<1x16x16x32xbf16, #tpu.memory_space<vmem>>, vector<1x8x16x32xbf16>
    %26 = vector.shape_cast %25 : vector<1x8x16x32xbf16> to vector<128x32xbf16>
    %cst_28 = arith.constant dense<0.000000e+00> : vector<128x128xf32>
    %27 = tpu.matmul %26, %6, %cst_28 {dimension_numbers = #tpu.dot_dimension_numbers<[1], [0], [0], [1], [0, 0, 1, 1], [], []>} : vector<128x32xbf16>, vector<32x128xbf16>, vector<128x128xf32> -> vector<128x128xf32>
    %28 = vector.broadcast %7 : vector<1x128xf32> to vector<128x128xf32>
    %29 = arith.addf %27, %28 : vector<128x128xf32>
    %cst_29 = arith.constant 0.000000e+00 : f32
    %cst_30 = arith.constant 6.000000e+00 : f32
    %30 = vector.broadcast %cst_29 : f32 to vector<128x128xf32>
    %31 = arith.maximumf %30, %29 : vector<128x128xf32>
    %32 = vector.broadcast %cst_30 : f32 to vector<128x128xf32>
    %33 = arith.minimumf %32, %31 : vector<128x128xf32>
    %34 = vector.shape_cast %33 : vector<128x128xf32> to vector<1x8x16x128xf32>
    %c1_i32_31 = arith.constant 1 : i32
    %35 = arith.addi %c1_i32_31, %23 : i32
    %c0_32 = arith.constant 0 : index
    %36 = arith.index_cast %35 : i32 to index
    %c0_33 = arith.constant 0 : index
    %c0_34 = arith.constant 0 : index
    %37 = vector.load %arg9[%c0_32, %36, %c0_33, %c0_34] : memref<1x18x24x128xf32, #tpu.memory_space<vmem>>, vector<1x8x16x128xf32>
    tpu.vector_store %arg9[%c0_32, %36, %c0_33, %c0_34], %34 {strides = array<i32>} : memref<1x18x24x128xf32, #tpu.memory_space<vmem>>, vector<1x8x16x128xf32>,
    %c2_i32 = arith.constant 2 : i32
    %c0_35 = arith.constant 0 : index
    %c0_36 = arith.constant 0 : index
    %38 = vector.load %arg4[%c0_35, %c0_36] : memref<9x128xf32, #tpu.memory_space<vmem>>, vector<9x128xf32>
    %39 = vector.extract_strided_slice %38 {offsets = [0, 0], sizes = [1, 128], strides = [1, 1]} : vector<9x128xf32> to vector<1x128xf32>
    %40 = vector.shape_cast %39 : vector<1x128xf32> to vector<128xf32>
    %41 = vector.shape_cast %40 : vector<128xf32> to vector<1x1x128xf32>
    %42 = vector.extract_strided_slice %38 {offsets = [1, 0], sizes = [1, 128], strides = [1, 1]} : vector<9x128xf32> to vector<1x128xf32>
    %43 = vector.shape_cast %42 : vector<1x128xf32> to vector<128xf32>
    %44 = vector.shape_cast %43 : vector<128xf32> to vector<1x1x128xf32>
    %45 = vector.extract_strided_slice %38 {offsets = [2, 0], sizes = [1, 128], strides = [1, 1]} : vector<9x128xf32> to vector<1x128xf32>
    %46 = vector.shape_cast %45 : vector<1x128xf32> to vector<128xf32>
    %47 = vector.shape_cast %46 : vector<128xf32> to vector<1x1x128xf32>
    %48 = vector.extract_strided_slice %38 {offsets = [3, 0], sizes = [1, 128], strides = [1, 1]} : vector<9x128xf32> to vector<1x128xf32>
    %49 = vector.shape_cast %48 : vector<1x128xf32> to vector<128xf32>
    %50 = vector.shape_cast %49 : vector<128xf32> to vector<1x1x128xf32>
    %51 = vector.extract_strided_slice %38 {offsets = [4, 0], sizes = [1, 128], strides = [1, 1]} : vector<9x128xf32> to vector<1x128xf32>
    %52 = vector.shape_cast %51 : vector<1x128xf32> to vector<128xf32>
    %53 = vector.shape_cast %52 : vector<128xf32> to vector<1x1x128xf32>
    %54 = vector.extract_strided_slice %38 {offsets = [5, 0], sizes = [1, 128], strides = [1, 1]} : vector<9x128xf32> to vector<1x128xf32>
    %55 = vector.shape_cast %54 : vector<1x128xf32> to vector<128xf32>
    %56 = vector.shape_cast %55 : vector<128xf32> to vector<1x1x128xf32>
    %57 = vector.extract_strided_slice %38 {offsets = [6, 0], sizes = [1, 128], strides = [1, 1]} : vector<9x128xf32> to vector<1x128xf32>
    %58 = vector.shape_cast %57 : vector<1x128xf32> to vector<128xf32>
    %59 = vector.shape_cast %58 : vector<128xf32> to vector<1x1x128xf32>
    %60 = vector.extract_strided_slice %38 {offsets = [7, 0], sizes = [1, 128], strides = [1, 1]} : vector<9x128xf32> to vector<1x128xf32>
    %61 = vector.shape_cast %60 : vector<1x128xf32> to vector<128xf32>
    %62 = vector.shape_cast %61 : vector<128xf32> to vector<1x1x128xf32>
    %63 = vector.extract_strided_slice %38 {offsets = [8, 0], sizes = [1, 128], strides = [1, 1]} : vector<9x128xf32> to vector<1x128xf32>
    %64 = vector.shape_cast %63 : vector<1x128xf32> to vector<128xf32>
    %65 = vector.shape_cast %64 : vector<128xf32> to vector<1x1x128xf32>
    %c0_37 = arith.constant 0 : index
    %c0_38 = arith.constant 0 : index
    %66 = vector.load %arg5[%c0_37, %c0_38] : memref<1x128xf32, #tpu.memory_space<vmem>>, vector<1x128xf32>
    %67 = vector.shape_cast %66 : vector<1x128xf32> to vector<1x1x128xf32>
    %c0_39 = arith.constant 0 : index
    %c0_40 = arith.constant 0 : index
    %68 = vector.load %arg6[%c0_39, %c0_40] : memref<128x32xbf16, #tpu.memory_space<vmem>>, vector<128x32xbf16>
    %c0_41 = arith.constant 0 : index
    %c0_42 = arith.constant 0 : index
    %69 = vector.load %arg7[%c0_41, %c0_42] : memref<1x32xf32, #tpu.memory_space<vmem>>, vector<1x32xf32>
    %c0_i32_43 = arith.constant 0 : i32
    %c8_i32_44 = arith.constant 8 : i32
    %70 = arith.muli %c0_i32_43, %c8_i32_44 : i32
    %c0_i32_45 = arith.constant 0 : i32
    %71 = arith.addi %70, %c0_i32_45 : i32
    %c0_46 = arith.constant 0 : index
    %72 = arith.index_cast %71 : i32 to index
    %c0_47 = arith.constant 0 : index
    %c0_48 = arith.constant 0 : index
    %73 = vector.load %arg9[%c0_46, %72, %c0_47, %c0_48] : memref<1x18x24x128xf32, #tpu.memory_space<vmem>>, vector<1x8x24x128xf32>
    %74 = vector.shape_cast %73 : vector<1x8x24x128xf32> to vector<8x24x128xf32>
    %c1_i32_49 = arith.constant 1 : i32
    %75 = tpu.dynamic_rotate %74 by %c1_i32_49 dim 1 : vector<8x24x128xf32>, i32 -> vector<8x24x128xf32>
    %76 = vector.extract_strided_slice %75 {offsets = [0, 0, 0], sizes = [8, 16, 128], strides = [1, 1, 1]} : vector<8x24x128xf32> to vector<8x16x128xf32>
    %77 = vector.broadcast %41 : vector<1x1x128xf32> to vector<8x16x128xf32>
    %78 = arith.mulf %76, %77 : vector<8x16x128xf32>
    %79 = vector.extract_strided_slice %74 {offsets = [0, 0, 0], sizes = [8, 16, 128], strides = [1, 1, 1]} : vector<8x24x128xf32> to vector<8x16x128xf32>
    %80 = vector.broadcast %44 : vector<1x1x128xf32> to vector<8x16x128xf32>
    %81 = arith.mulf %79, %80 : vector<8x16x128xf32>
    %82 = arith.addf %78, %81 : vector<8x16x128xf32>
    %c23_i32 = arith.constant 23 : i32
    %83 = tpu.dynamic_rotate %74 by %c23_i32 dim 1 : vector<8x24x128xf32>, i32 -> vector<8x24x128xf32>
    %84 = vector.extract_strided_slice %83 {offsets = [0, 0, 0], sizes = [8, 16, 128], strides = [1, 1, 1]} : vector<8x24x128xf32> to vector<8x16x128xf32>
    %85 = vector.broadcast %47 : vector<1x1x128xf32> to vector<8x16x128xf32>
    %86 = arith.mulf %84, %85 : vector<8x16x128xf32>
    %87 = arith.addf %82, %86 : vector<8x16x128xf32>
    %c1_i32_50 = arith.constant 1 : i32
    %88 = arith.addi %70, %c1_i32_50 : i32
    %c0_51 = arith.constant 0 : index
    %89 = arith.index_cast %88 : i32 to index
    %c0_52 = arith.constant 0 : index
    %c0_53 = arith.constant 0 : index
    %90 = vector.load %arg9[%c0_51, %89, %c0_52, %c0_53] : memref<1x18x24x128xf32, #tpu.memory_space<vmem>>, vector<1x8x24x128xf32>
    %91 = vector.shape_cast %90 : vector<1x8x24x128xf32> to vector<8x24x128xf32>
    %c1_i32_54 = arith.constant 1 : i32
    %92 = tpu.dynamic_rotate %91 by %c1_i32_54 dim 1 : vector<8x24x128xf32>, i32 -> vector<8x24x128xf32>
    %93 = vector.extract_strided_slice %92 {offsets = [0, 0, 0], sizes = [8, 16, 128], strides = [1, 1, 1]} : vector<8x24x128xf32> to vector<8x16x128xf32>
    %94 = vector.broadcast %50 : vector<1x1x128xf32> to vector<8x16x128xf32>
    %95 = arith.mulf %93, %94 : vector<8x16x128xf32>
    %96 = arith.addf %87, %95 : vector<8x16x128xf32>
    %97 = vector.extract_strided_slice %91 {offsets = [0, 0, 0], sizes = [8, 16, 128], strides = [1, 1, 1]} : vector<8x24x128xf32> to vector<8x16x128xf32>
    %98 = vector.broadcast %53 : vector<1x1x128xf32> to vector<8x16x128xf32>
    %99 = arith.mulf %97, %98 : vector<8x16x128xf32>
    %100 = arith.addf %96, %99 : vector<8x16x128xf32>
    %c23_i32_55 = arith.constant 23 : i32
    %101 = tpu.dynamic_rotate %91 by %c23_i32_55 dim 1 : vector<8x24x128xf32>, i32 -> vector<8x24x128xf32>
    %102 = vector.extract_strided_slice %101 {offsets = [0, 0, 0], sizes = [8, 16, 128], strides = [1, 1, 1]} : vector<8x24x128xf32> to vector<8x16x128xf32>
    %103 = vector.broadcast %56 : vector<1x1x128xf32> to vector<8x16x128xf32>
    %104 = arith.mulf %102, %103 : vector<8x16x128xf32>
    %105 = arith.addf %100, %104 : vector<8x16x128xf32>
    %c2_i32_56 = arith.constant 2 : i32
    %106 = arith.addi %70, %c2_i32_56 : i32
    %c0_57 = arith.constant 0 : index
    %107 = arith.index_cast %106 : i32 to index
    %c0_58 = arith.constant 0 : index
    %c0_59 = arith.constant 0 : index
    %108 = vector.load %arg9[%c0_57, %107, %c0_58, %c0_59] : memref<1x18x24x128xf32, #tpu.memory_space<vmem>>, vector<1x8x24x128xf32>
    %109 = vector.shape_cast %108 : vector<1x8x24x128xf32> to vector<8x24x128xf32>
    %c1_i32_60 = arith.constant 1 : i32
    %110 = tpu.dynamic_rotate %109 by %c1_i32_60 dim 1 : vector<8x24x128xf32>, i32 -> vector<8x24x128xf32>
    %111 = vector.extract_strided_slice %110 {offsets = [0, 0, 0], sizes = [8, 16, 128], strides = [1, 1, 1]} : vector<8x24x128xf32> to vector<8x16x128xf32>
    %112 = vector.broadcast %59 : vector<1x1x128xf32> to vector<8x16x128xf32>
    %113 = arith.mulf %111, %112 : vector<8x16x128xf32>
    %114 = arith.addf %105, %113 : vector<8x16x128xf32>
    %115 = vector.extract_strided_slice %109 {offsets = [0, 0, 0], sizes = [8, 16, 128], strides = [1, 1, 1]} : vector<8x24x128xf32> to vector<8x16x128xf32>
    %116 = vector.broadcast %62 : vector<1x1x128xf32> to vector<8x16x128xf32>
    %117 = arith.mulf %115, %116 : vector<8x16x128xf32>
    %118 = arith.addf %114, %117 : vector<8x16x128xf32>
    %c23_i32_61 = arith.constant 23 : i32
    %119 = tpu.dynamic_rotate %109 by %c23_i32_61 dim 1 : vector<8x24x128xf32>, i32 -> vector<8x24x128xf32>
    %120 = vector.extract_strided_slice %119 {offsets = [0, 0, 0], sizes = [8, 16, 128], strides = [1, 1, 1]} : vector<8x24x128xf32> to vector<8x16x128xf32>
    %121 = vector.broadcast %65 : vector<1x1x128xf32> to vector<8x16x128xf32>
    %122 = arith.mulf %120, %121 : vector<8x16x128xf32>
    %123 = arith.addf %118, %122 : vector<8x16x128xf32>
    %124 = vector.broadcast %67 : vector<1x1x128xf32> to vector<8x16x128xf32>
    %125 = arith.addf %123, %124 : vector<8x16x128xf32>
    %cst_62 = arith.constant 0.000000e+00 : f32
    %cst_63 = arith.constant 6.000000e+00 : f32
    %126 = vector.broadcast %cst_62 : f32 to vector<8x16x128xf32>
    %127 = arith.maximumf %126, %125 : vector<8x16x128xf32>
    %128 = vector.broadcast %cst_63 : f32 to vector<8x16x128xf32>
    %129 = arith.minimumf %128, %127 : vector<8x16x128xf32>
    %130 = vector.shape_cast %129 : vector<8x16x128xf32> to vector<128x128xf32>
    %131 = arith.truncf %130 : vector<128x128xf32> to vector<128x128xbf16>
    %cst_64 = arith.constant dense<0.000000e+00> : vector<128x32xf32>
    %132 = tpu.matmul %131, %68, %cst_64 {dimension_numbers = #tpu.dot_dimension_numbers<[1], [0], [0], [1], [0, 0, 1, 1], [], []>} : vector<128x128xbf16>, vector<128x32xbf16>, vector<128x32xf32> -> vector<128x32xf32>
    %133 = vector.broadcast %69 : vector<1x32xf32> to vector<128x32xf32>
    %134 = arith.addf %132, %133 : vector<128x32xf32>
    %c0_65 = arith.constant 0 : index
    %135 = arith.index_cast %70 : i32 to index
    %c0_66 = arith.constant 0 : index
    %c0_67 = arith.constant 0 : index
    %136 = vector.load %arg1[%c0_65, %135, %c0_66, %c0_67] : memref<1x16x16x32xbf16, #tpu.memory_space<vmem>>, vector<1x8x16x32xbf16>
    %137 = vector.shape_cast %136 : vector<1x8x16x32xbf16> to vector<128x32xbf16>
    %138 = arith.extf %137 : vector<128x32xbf16> to vector<128x32xf32>
    %139 = arith.addf %134, %138 : vector<128x32xf32>
    %140 = vector.shape_cast %139 : vector<128x32xf32> to vector<1x8x16x32xf32>
    %c0_68 = arith.constant 0 : index
    %141 = arith.index_cast %70 : i32 to index
    %c0_69 = arith.constant 0 : index
    %c0_70 = arith.constant 0 : index
    %142 = vector.load %arg8[%c0_68, %141, %c0_69, %c0_70] : memref<1x16x16x32xf32, #tpu.memory_space<vmem>>, vector<1x8x16x32xf32>
    tpu.vector_store %arg8[%c0_68, %141, %c0_69, %c0_70], %140 {strides = array<i32>} : memref<1x16x16x32xf32, #tpu.memory_space<vmem>>, vector<1x8x16x32xf32>,
    %c1_i32_71 = arith.constant 1 : i32
    %c8_i32_72 = arith.constant 8 : i32
    %143 = arith.muli %c1_i32_71, %c8_i32_72 : i32
    %c0_i32_73 = arith.constant 0 : i32
    %144 = arith.addi %143, %c0_i32_73 : i32
    %c0_74 = arith.constant 0 : index
    %145 = arith.index_cast %144 : i32 to index
    %c0_75 = arith.constant 0 : index
    %c0_76 = arith.constant 0 : index
    %146 = vector.load %arg9[%c0_74, %145, %c0_75, %c0_76] : memref<1x18x24x128xf32, #tpu.memory_space<vmem>>, vector<1x8x24x128xf32>
    %147 = vector.shape_cast %146 : vector<1x8x24x128xf32> to vector<8x24x128xf32>
    %c1_i32_77 = arith.constant 1 : i32
    %148 = tpu.dynamic_rotate %147 by %c1_i32_77 dim 1 : vector<8x24x128xf32>, i32 -> vector<8x24x128xf32>
    %149 = vector.extract_strided_slice %148 {offsets = [0, 0, 0], sizes = [8, 16, 128], strides = [1, 1, 1]} : vector<8x24x128xf32> to vector<8x16x128xf32>
    %150 = vector.broadcast %41 : vector<1x1x128xf32> to vector<8x16x128xf32>
    %151 = arith.mulf %149, %150 : vector<8x16x128xf32>
    %152 = vector.extract_strided_slice %147 {offsets = [0, 0, 0], sizes = [8, 16, 128], strides = [1, 1, 1]} : vector<8x24x128xf32> to vector<8x16x128xf32>
    %153 = vector.broadcast %44 : vector<1x1x128xf32> to vector<8x16x128xf32>
    %154 = arith.mulf %152, %153 : vector<8x16x128xf32>
    %155 = arith.addf %151, %154 : vector<8x16x128xf32>
    %c23_i32_78 = arith.constant 23 : i32
    %156 = tpu.dynamic_rotate %147 by %c23_i32_78 dim 1 : vector<8x24x128xf32>, i32 -> vector<8x24x128xf32>
    %157 = vector.extract_strided_slice %156 {offsets = [0, 0, 0], sizes = [8, 16, 128], strides = [1, 1, 1]} : vector<8x24x128xf32> to vector<8x16x128xf32>
    %158 = vector.broadcast %47 : vector<1x1x128xf32> to vector<8x16x128xf32>
    %159 = arith.mulf %157, %158 : vector<8x16x128xf32>
    %160 = arith.addf %155, %159 : vector<8x16x128xf32>
    %c1_i32_79 = arith.constant 1 : i32
    %161 = arith.addi %143, %c1_i32_79 : i32
    %c0_80 = arith.constant 0 : index
    %162 = arith.index_cast %161 : i32 to index
    %c0_81 = arith.constant 0 : index
    %c0_82 = arith.constant 0 : index
    %163 = vector.load %arg9[%c0_80, %162, %c0_81, %c0_82] : memref<1x18x24x128xf32, #tpu.memory_space<vmem>>, vector<1x8x24x128xf32>
    %164 = vector.shape_cast %163 : vector<1x8x24x128xf32> to vector<8x24x128xf32>
    %c1_i32_83 = arith.constant 1 : i32
    %165 = tpu.dynamic_rotate %164 by %c1_i32_83 dim 1 : vector<8x24x128xf32>, i32 -> vector<8x24x128xf32>
    %166 = vector.extract_strided_slice %165 {offsets = [0, 0, 0], sizes = [8, 16, 128], strides = [1, 1, 1]} : vector<8x24x128xf32> to vector<8x16x128xf32>
    %167 = vector.broadcast %50 : vector<1x1x128xf32> to vector<8x16x128xf32>
    %168 = arith.mulf %166, %167 : vector<8x16x128xf32>
    %169 = arith.addf %160, %168 : vector<8x16x128xf32>
    %170 = vector.extract_strided_slice %164 {offsets = [0, 0, 0], sizes = [8, 16, 128], strides = [1, 1, 1]} : vector<8x24x128xf32> to vector<8x16x128xf32>
    %171 = vector.broadcast %53 : vector<1x1x128xf32> to vector<8x16x128xf32>
    %172 = arith.mulf %170, %171 : vector<8x16x128xf32>
    %173 = arith.addf %169, %172 : vector<8x16x128xf32>
    %c23_i32_84 = arith.constant 23 : i32
    %174 = tpu.dynamic_rotate %164 by %c23_i32_84 dim 1 : vector<8x24x128xf32>, i32 -> vector<8x24x128xf32>
    %175 = vector.extract_strided_slice %174 {offsets = [0, 0, 0], sizes = [8, 16, 128], strides = [1, 1, 1]} : vector<8x24x128xf32> to vector<8x16x128xf32>
    %176 = vector.broadcast %56 : vector<1x1x128xf32> to vector<8x16x128xf32>
    %177 = arith.mulf %175, %176 : vector<8x16x128xf32>
    %178 = arith.addf %173, %177 : vector<8x16x128xf32>
    %c2_i32_85 = arith.constant 2 : i32
    %179 = arith.addi %143, %c2_i32_85 : i32
    %c0_86 = arith.constant 0 : index
    %180 = arith.index_cast %179 : i32 to index
    %c0_87 = arith.constant 0 : index
    %c0_88 = arith.constant 0 : index
    %181 = vector.load %arg9[%c0_86, %180, %c0_87, %c0_88] : memref<1x18x24x128xf32, #tpu.memory_space<vmem>>, vector<1x8x24x128xf32>
    %182 = vector.shape_cast %181 : vector<1x8x24x128xf32> to vector<8x24x128xf32>
    %c1_i32_89 = arith.constant 1 : i32
    %183 = tpu.dynamic_rotate %182 by %c1_i32_89 dim 1 : vector<8x24x128xf32>, i32 -> vector<8x24x128xf32>
    %184 = vector.extract_strided_slice %183 {offsets = [0, 0, 0], sizes = [8, 16, 128], strides = [1, 1, 1]} : vector<8x24x128xf32> to vector<8x16x128xf32>
    %185 = vector.broadcast %59 : vector<1x1x128xf32> to vector<8x16x128xf32>
    %186 = arith.mulf %184, %185 : vector<8x16x128xf32>
    %187 = arith.addf %178, %186 : vector<8x16x128xf32>
    %188 = vector.extract_strided_slice %182 {offsets = [0, 0, 0], sizes = [8, 16, 128], strides = [1, 1, 1]} : vector<8x24x128xf32> to vector<8x16x128xf32>
    %189 = vector.broadcast %62 : vector<1x1x128xf32> to vector<8x16x128xf32>
    %190 = arith.mulf %188, %189 : vector<8x16x128xf32>
    %191 = arith.addf %187, %190 : vector<8x16x128xf32>
    %c23_i32_90 = arith.constant 23 : i32
    %192 = tpu.dynamic_rotate %182 by %c23_i32_90 dim 1 : vector<8x24x128xf32>, i32 -> vector<8x24x128xf32>
    %193 = vector.extract_strided_slice %192 {offsets = [0, 0, 0], sizes = [8, 16, 128], strides = [1, 1, 1]} : vector<8x24x128xf32> to vector<8x16x128xf32>
    %194 = vector.broadcast %65 : vector<1x1x128xf32> to vector<8x16x128xf32>
    %195 = arith.mulf %193, %194 : vector<8x16x128xf32>
    %196 = arith.addf %191, %195 : vector<8x16x128xf32>
    %197 = vector.broadcast %67 : vector<1x1x128xf32> to vector<8x16x128xf32>
    %198 = arith.addf %196, %197 : vector<8x16x128xf32>
    %cst_91 = arith.constant 0.000000e+00 : f32
    %cst_92 = arith.constant 6.000000e+00 : f32
    %199 = vector.broadcast %cst_91 : f32 to vector<8x16x128xf32>
    %200 = arith.maximumf %199, %198 : vector<8x16x128xf32>
    %201 = vector.broadcast %cst_92 : f32 to vector<8x16x128xf32>
    %202 = arith.minimumf %201, %200 : vector<8x16x128xf32>
    %203 = vector.shape_cast %202 : vector<8x16x128xf32> to vector<128x128xf32>
    %204 = arith.truncf %203 : vector<128x128xf32> to vector<128x128xbf16>
    %cst_93 = arith.constant dense<0.000000e+00> : vector<128x32xf32>
    %205 = tpu.matmul %204, %68, %cst_93 {dimension_numbers = #tpu.dot_dimension_numbers<[1], [0], [0], [1], [0, 0, 1, 1], [], []>} : vector<128x128xbf16>, vector<128x32xbf16>, vector<128x32xf32> -> vector<128x32xf32>
    %206 = vector.broadcast %69 : vector<1x32xf32> to vector<128x32xf32>
    %207 = arith.addf %205, %206 : vector<128x32xf32>
    %c0_94 = arith.constant 0 : index
    %208 = arith.index_cast %143 : i32 to index
    %c0_95 = arith.constant 0 : index
    %c0_96 = arith.constant 0 : index
    %209 = vector.load %arg1[%c0_94, %208, %c0_95, %c0_96] : memref<1x16x16x32xbf16, #tpu.memory_space<vmem>>, vector<1x8x16x32xbf16>
    %210 = vector.shape_cast %209 : vector<1x8x16x32xbf16> to vector<128x32xbf16>
    %211 = arith.extf %210 : vector<128x32xbf16> to vector<128x32xf32>
    %212 = arith.addf %207, %211 : vector<128x32xf32>
    %213 = vector.shape_cast %212 : vector<128x32xf32> to vector<1x8x16x32xf32>
    %c0_97 = arith.constant 0 : index
    %214 = arith.index_cast %143 : i32 to index
    %c0_98 = arith.constant 0 : index
    %c0_99 = arith.constant 0 : index
    %215 = vector.load %arg8[%c0_97, %214, %c0_98, %c0_99] : memref<1x16x16x32xf32, #tpu.memory_space<vmem>>, vector<1x8x16x32xf32>
    tpu.vector_store %arg8[%c0_97, %214, %c0_98, %c0_99], %213 {strides = array<i32>} : memref<1x16x16x32xf32, #tpu.memory_space<vmem>>, vector<1x8x16x32xf32>,
    %c2_i32_100 = arith.constant 2 : i32
    return
  }
  func.func @transform_0(%arg0: i32) -> (i32, i32, i32, i32) {
    %c0_i32 = arith.constant 0 : i32
    %c0_i32_0 = arith.constant 0 : i32
    %c0_i32_1 = arith.constant 0 : i32
    %c0_i32_2 = arith.constant 0 : i32
    return %arg0, %c0_i32, %c0_i32_0, %c0_i32_1 : i32, i32, i32, i32
  }
  func.func @transform_1(%arg0: i32) -> (i32, i32) {
    %c0_i32 = arith.constant 0 : i32
    %c0_i32_0 = arith.constant 0 : i32
    %c0_i32_1 = arith.constant 0 : i32
    return %c0_i32, %c0_i32_0 : i32, i32
  }
  func.func @transform_2(%arg0: i32) -> (i32, i32) {
    %c0_i32 = arith.constant 0 : i32
    %c0_i32_0 = arith.constant 0 : i32
    %c0_i32_1 = arith.constant 0 : i32
    return %c0_i32, %c0_i32_0 : i32, i32
  }
  func.func @transform_3(%arg0: i32) -> (i32, i32) {
    %c0_i32 = arith.constant 0 : i32
    %c0_i32_0 = arith.constant 0 : i32
    %c0_i32_1 = arith.constant 0 : i32
    return %c0_i32, %c0_i32_0 : i32, i32
  }
  func.func @transform_4(%arg0: i32) -> (i32, i32) {
    %c0_i32 = arith.constant 0 : i32
    %c0_i32_0 = arith.constant 0 : i32
    %c0_i32_1 = arith.constant 0 : i32
    return %c0_i32, %c0_i32_0 : i32, i32
  }
  func.func @transform_5(%arg0: i32) -> (i32, i32) {
    %c0_i32 = arith.constant 0 : i32
    %c0_i32_0 = arith.constant 0 : i32
    %c0_i32_1 = arith.constant 0 : i32
    return %c0_i32, %c0_i32_0 : i32, i32
  }
  func.func @transform_6(%arg0: i32) -> (i32, i32) {
    %c0_i32 = arith.constant 0 : i32
    %c0_i32_0 = arith.constant 0 : i32
    %c0_i32_1 = arith.constant 0 : i32
    return %c0_i32, %c0_i32_0 : i32, i32
  }
  func.func @transform_7(%arg0: i32) -> (i32, i32, i32, i32) {
    %c0_i32 = arith.constant 0 : i32
    %c0_i32_0 = arith.constant 0 : i32
    %c0_i32_1 = arith.constant 0 : i32
    %c0_i32_2 = arith.constant 0 : i32
    return %arg0, %c0_i32, %c0_i32_0, %c0_i32_1 : i32, i32, i32, i32
  }
}

</mosaic_0001>

<bundles_post_ra>
// kernel: blk_stride_forward.1
= control target key start
LH: loop header
LB: loop body
LE: loop exit
PB: predicated region body
PF: predicated region fallthrough
CT: control target
= control target key end

     0   :  { %12 = vsyncpa [#allocation4], 0  ;;  %s4789_s0 = inlined_call_operand.vmem [shape: bf16[2,16,16,32], index: 0, kind: input, shape index: {}]   ;;  %s4790_s1 = inlined_call_operand.vmem [shape: bf16[32,128], index: 1, kind: input, shape index: {}]   ;;  %s4791_s2 = inlined_call_operand.vmem [shape: f32[1,128], index: 2, kind: input, shape index: {}]   ;;  %s4792_s3 = inlined_call_operand.vmem [shape: f32[9,128], index: 3, kind: input, shape index: {}]   ;;  %s4793_s4 = inlined_call_operand.vmem [shape: f32[1,128], index: 4, kind: input, shape index: {}]   ;;  %s4794_s5 = inlined_call_operand.vmem [shape: bf16[128,32], index: 5, kind: input, shape index: {}]   ;;  %s4795_s6 = inlined_call_operand.vmem [shape: f32[1,32], index: 6, kind: input, shape index: {}]   ;;  %s4796_s7 = inlined_call_operand.hbm [shape: f32[2,16,16,32], index: 7, kind: output, shape index: {}]  }
   0x1   :  { %14 = vsyncpa [#allocation4 + $0x1], 0  ;;  %s3099_s24 = smov 0   ;;  %s3101_s25 = smov 0  }
   0x2   :  { %s3103_s26 = smov 0   ;;  %s3105_s27 = smov 0  }
   0x3 LB: > { %s3120_s28 = sadd.s32 4294967295, %s3053_s27   ;;  %s2580_s29 = sadd.s32 4294967294, %s3053_s27   ;;  %s3053_s27 = sphi %s3105_s27, %s5138_s27   ;;  %s3049_s26 = sphi %s3103_s26, %s5137_s26   ;;  %s3045_s25 = sphi %s3101_s25, %s5136_s25   ;;  %s3041_s24 = sphi %s3099_s24, %s5135_s24  }
   0x4   : > { %s3124_s30 = sadd.s32 1, %s3053_s27   ;;  %s179_s8 = sadd.s32 1, %s3049_s26 }
   0x5   : > { %s176_s9 = ssub.s32 %s3053_s27, %s3124_s30  ;;  %p189_p0 = scmp.ne.s32.totalorder %s3049_s26, %s3045_s25 }
   0x6   : > { %p177_p1 = scmp.eq.s32.totalorder %s176_s9, 0  ;;  %p190_p2 = scmp.eq.s32.totalorder %s3120_s28, 1 }
   0x7   : > { %p195_p3 = scmp.ne.s32.totalorder %s3045_s25, %s3041_s24  ;;  %p196_p4 = scmp.eq.s32.totalorder %s2580_s29, 1 }
   0x8   : > { %s3135_s10 = scalar_select %p177_p1, %s3049_s26, %s179_s8  }
   0x9   : > { %p3137_p5 = por %p190_p2, %p189_p0  ;;  %p3141_p6 = por %p196_p4, %p195_p3 }
   0xa   : > { %p2583_p7 = scmp.ge.s32.totalorder %s3053_s27, 1  ;;  %p240_p8 = scmp.lt.s32.totalorder %s3053_s27, 3 }
   0xc   : > { %p241_p9 = pnand %p2583_p7, %p240_p8 }
   0xe   : > { %244 = sbr.rel (%p241_p9) target bundleno = 712 (0x2c8), region = 48 }
  0x15   : > { %v2965_v0 = vld [vmem:[%s4790_s1] sm:$0xff]   ;;  %p272_p10 = scmp.lt.s32.totalorder %s3120_s28, 1  ;;  %v2966_v1 = vld [vmem:[%s4790_s1 + $0x8] sm:$0xff]   ;;  %vm381_vm0 = vcmask 261120   ;;  %v2985_v20 = vld [vmem:[%s4794_s5 + $0x10] sm:$0xff]   ;;  %v846_v26 = vlaneseq  ;;  %v3055_v31 = vmov 0.0  }
  0x16   : > { %2819 = vmatprep.subr.bf16.mxu0 %v2965_v0  ;;  %2839 = vmatprep.subr.bf16.mxu1 %v2965_v0  ;;  %v2983_v18 = vld [vmem:[%s4794_s5] sm:$0xff]   ;;  %v2984_v19 = vld [vmem:[%s4794_s5 + $0x8] sm:$0xff]   ;;  %v2986_v21 = vld [vmem:[%s4794_s5 + $0x18] sm:$0xff]   ;;  %v3223_v32 = vrot.slane %v3055_v31, 7  ;;  %v3233_v38 = vrot.slane %v3055_v31, 1  ;;  %s269_s19 = sand.u32 1, %s3045_s25  }
  0x17   : > { %s273_s17 = scalar_select %p272_p10, %s3120_s28, 1  ;;  %2820 = vmatpush3.bf16.msra.mxu0 %v2965_v0  ;;  %2840 = vmatpush3.bf16.msra.mxu1 %v2965_v0  ;;  %v2987_v22 = vld [vmem:[%s4794_s5 + $0x20] sm:$0xff]   ;;  %v2988_v23 = vld [vmem:[%s4794_s5 + $0x28] sm:$0xff]   ;;  %v2989_v24 = vld [vmem:[%s4794_s5 + $0x30] sm:$0xff]   ;;  %v3216_v27 = vshrl.u32 %v846_v26, 7 }
  0x18   : > { %2821 = vmatprep.subr.bf16.mxu0 %v2966_v1  ;;  %2841 = vmatprep.subr.bf16.mxu1 %v2966_v1  ;;  %v2990_v25 = vld [vmem:[%s4794_s5 + $0x38] sm:$0xff]   ;;  %v778_v30 = vld [vmem:[%s4792_s3] sm:$0xff]  ;;  %4855 = vst [vmem:[#allocation6_spill] sm:$0xff] %v3223_v32  ;;  %s2584_s23 = sshll.u32 %s269_s19, 8  ;;  %s2687_s8 = sshll.u32 %s3120_s28, 12 }
  0x19   : > { %s2686_s18 = sshll.u32 %s273_s17, 7  ;;  %v867_v28 = vsub.s32 0, %v3216_v27  ;;  %v887_v29 = vsub.s32 1, %v3216_v27  ;;  %v964_v35 = vsub.s32 2, %v3216_v27  ;;  %v3240_v40 = vld [vmem:[%s4791_s2] ss:$0 sm:$0xff]  ;;  %s4736_s14 = scalar_lea.hbm %s4796_s7, %s2687_s8 }
  0x1a   : > { %s3158_s21 = scalar_lea.vmem %s4789_s0, %s2686_s18  ;;  %v1100_v41 = vsub.s32 4, %v3216_v27  ;;  %v1064_v42 = vsub.s32 3, %v3216_v27  ;;  %v1313_v46 = vsub.s32 7, %v3216_v27  ;;  %v1176_v49 = vsub.s32 5, %v3216_v27  ;;  %s4629_s29 = scalar_lea.vmem [#allocation3], %s2584_s23 }
  0x1b   : > { %v2967_v2 = vld [vmem:[%s3158_s21] sm:$0xff]   ;;  %2822 = vmatpush3.bf16.msra.mxu0 %v2966_v1  ;;  %v2968_v3 = vld [vmem:[%s3158_s21 + $0x8] sm:$0xff]   ;;  %2842 = vmatpush3.bf16.msra.mxu1 %v2966_v1  ;;  %v2969_v4 = vld [vmem:[%s3158_s21 + $0x10] sm:$0xff]   ;;  %v3225_v33 = vrot.slane %v778_v30, %v867_v28  ;;  %v3227_v34 = vrot.slane %v778_v30, %v887_v29  ;;  %v3235_v39 = vrot.slane %v778_v30, %v964_v35  ;;  %v1277_v50 = vsub.s32 6, %v3216_v27  ;;  %s2518_s9 = sshll.u32 %s4629_s29, 4  ;;  %s4748_s28 = scalar_lea.sflag [#allocation4], %s269_s19  ;;  %s4738_s9 = int_to_ptr.vmem [resolvable:$true] %s2518_s9 }
  0x1c   : > { %2823 = vmatprep.mubr.msk.bf16.mxu0 %vm381_vm0, %v2967_v2  ;;  %v2971_v5 = vld [vmem:[%s3158_s21 + $0x40] sm:$0xff]   ;;  %v2972_v6 = vld [vmem:[%s3158_s21 + $0x48] sm:$0xff]   ;;  %v2970_v7 = vld [vmem:[%s3158_s21 + $0x18] sm:$0xff]   ;;  %2859 = vmatprep.subr.bf16.mxu0 %v2983_v18  ;;  %vm848_vm1 = vcmp.lt.s32.totalorder %v3216_v27, 1  ;;  %v3251_v51 = vrot.slane %v778_v30, %v1100_v41  ;;  %v3254_v55 = vrot.slane %v778_v30, %v1064_v42  ;;  %v3260_v62 = vrot.slane %v778_v30, %v1313_v46  ;;  %s2991_s15 = scalar_lea.vmem %s4738_s9, 4096  ;;  %s3056_s16 = smov [#allocation3]  }
  0x1d   : > { %2843 = vmatprep.mubr.msk.bf16.mxu1 %vm381_vm0, %v2971_v5  ;;  %v2975_v8 = vld [vmem:[%s3158_s21 + $0x50] sm:$0xff]   ;;  %v2973_v9 = vld [vmem:[%s3158_s21 + $0x20] sm:$0xff]   ;;  %v2976_v10 = vld [vmem:[%s3158_s21 + $0x58] sm:$0xff]   ;;  %2891 = vmatprep.subr.bf16.mxu1 %v2983_v18  ;;  %v869_v36 = vmul.f32 %v3225_v33, %v3223_v32  ;;  %v889_v37 = vmul.f32 0.0, %v3227_v34  ;;  %v966_v44 = vmul.f32 %v3235_v39, %v3233_v38  ;;  %vm945_vm2 = vcmp.lt.s32.totalorder %v3216_v27, 7  ;;  %p2992_p11 = scmp.ne.s32.totalorder %s4738_s9, %s2991_s15  ;;  %s2995_s17 = sshll.u32 %s3056_s16, 4  ;;  %s2996_s17 = int_to_ptr.vmem [resolvable:$false] %s2995_s17 }
  0x1e   : > { %2824 = vmatmul.mubr.msk.bf16.vlgmr.msra.gmra.mrb[0].mxu0 %vm381_vm0, %v2968_v3  ;;  %2844 = vmatmul.mubr.msk.bf16.vlgmr.msra.gmra.mrb[0].mxu1 %vm381_vm0, %v2972_v6  ;;  %v2979_v11 = vld [vmem:[%s3158_s21 + $0x60] sm:$0xff]   ;;  %v2974_v12 = vld [vmem:[%s3158_s21 + $0x28] sm:$0xff]   ;;  %v2977_v13 = vld [vmem:[%s3158_s21 + $0x30] sm:$0xff]   ;;  %v3268_v3 = vrot.slane %v778_v30, %v1176_v49  ;;  %s2997_s18 = scalar_lea.vmem %s2996_s17, 8192  ;;  %p2998_p0 = scmp.lt.s32.totalorder %s4738_s9, %s2996_s17 }
  0x1f   : > { %2827 = vmatprep.mubr.msk.bf16.mxu0 %vm381_vm0, %v2969_v4  ;;  %2847 = vmatprep.mubr.msk.bf16.mxu1 %vm381_vm0, %v2975_v8  ;;  %v2980_v14 = vld [vmem:[%s3158_s21 + $0x68] sm:$0xff]   ;;  %v2981_v15 = vld [vmem:[%s3158_s21 + $0x70] sm:$0xff]   ;;  %v2978_v16 = vld [vmem:[%s3158_s21 + $0x38] sm:$0xff]   ;;  %v905_v43 = vadd.f32 %v889_v37, %v869_v36  ;;  %v3270_v4 = vrot.slane %v778_v30, %v1277_v50  ;;  %p2993_p12 = pnand %p2992_p11, %p3137_p5  ;;  %p2999_p1 = scmp.lt.s32.totalorder %s2997_s18, %s2991_s15 }
  0x20   : > { %v2982_v17 = vld [vmem:[%s3158_s21 + $0x78] sm:$0xff]   ;;  %2860 = vmatpush3.bf16.msra.mxu0 %v2983_v18  ;;  %2892 = vmatpush3.bf16.msra.mxu1 %v2983_v18 }
  0x21   : > { %2861 = vmatprep.subr.bf16.mxu0 %v2984_v19  ;;  %2893 = vmatprep.subr.bf16.mxu1 %v2984_v19  ;;  %v3256_v56 = vadd.f32 %v966_v44, %v905_v43  ;;  %p2994_p13 = pneg %p2993_p12  ;;  %p3000_p2 = por %p2999_p1, %p2998_p0 }
  0x23   : > { %p3001_p3 = pnand %p3000_p2, %p2994_p13 }
  0x24   : > { %2862 = vmatpush3.bf16.msra.mxu0 %v2984_v19  ;;  %2894 = vmatpush3.bf16.msra.mxu1 %v2984_v19 }
  0x25   : > { %2863 = vmatprep.subr.bf16.mxu0 %v2985_v20  ;;  %2895 = vmatprep.subr.bf16.mxu1 %v2985_v20 }
  0x26   : > { %2828 = vmatmul.mubr.msk.bf16.gmra.mrb[4].mxu0 %vm381_vm0, %v2970_v7  ;;  %2848 = vmatmul.mubr.msk.bf16.gmra.mrb[4].mxu1 %vm381_vm0, %v2976_v10 }
  0x27   : > { %2831 = vmatprep.mubr.msk.bf16.mxu0 %vm381_vm0, %v2973_v9  ;;  %2851 = vmatprep.mubr.msk.bf16.mxu1 %vm381_vm0, %v2979_v11 }
  0x28   : > { %2864 = vmatpush3.bf16.msra.mxu0 %v2985_v20  ;;  %2896 = vmatpush3.bf16.msra.mxu1 %v2985_v20 }
  0x29   : > { %2865 = vmatprep.subr.bf16.mxu0 %v2986_v21  ;;  %2897 = vmatprep.subr.bf16.mxu1 %v2986_v21 }
  0x2c   : > { %2866 = vmatpush3.bf16.msra.mxu0 %v2986_v21  ;;  %2898 = vmatpush3.bf16.msra.mxu1 %v2986_v21 }
  0x2d   : > { %2867 = vmatprep.subr.bf16.mxu0 %v2987_v22  ;;  %2899 = vmatprep.subr.bf16.mxu1 %v2987_v22 }
  0x2e   : > { %2832 = vmatmul.mubr.msk.bf16.gmra.mrb[8].mxu0 %vm381_vm0, %v2974_v12  ;;  %2852 = vmatmul.mubr.msk.bf16.gmra.mrb[8].mxu1 %vm381_vm0, %v2980_v14 }
  0x2f   : > { %2835 = vmatprep.mubr.msk.bf16.mxu0 %vm381_vm0, %v2977_v13  ;;  %2855 = vmatprep.mubr.msk.bf16.mxu1 %vm381_vm0, %v2981_v15 }
  0x30   : > { %2868 = vmatpush3.bf16.msra.mxu0 %v2987_v22  ;;  %2900 = vmatpush3.bf16.msra.mxu1 %v2987_v22 }
  0x31   : > { %2869 = vmatprep.subr.bf16.mxu0 %v2988_v23  ;;  %2901 = vmatprep.subr.bf16.mxu1 %v2988_v23 }
  0x34   : > { %2870 = vmatpush3.bf16.msra.mxu0 %v2988_v23  ;;  %2902 = vmatpush3.bf16.msra.mxu1 %v2988_v23 }
  0x35   : > { %2871 = vmatprep.subr.bf16.mxu0 %v2989_v24  ;;  %2903 = vmatprep.subr.bf16.mxu1 %v2989_v24 }
  0x36   : > { %2836 = vmatmul.mubr.msk.bf16.gmra.mrb[12].mxu0 %vm381_vm0, %v2978_v16  ;;  %2856 = vmatmul.mubr.msk.bf16.gmra.mrb[12].mxu1 %vm381_vm0, %v2982_v17 }
  0x38   : > { %2872 = vmatpush3.bf16.msra.mxu0 %v2989_v24  ;;  %2904 = vmatpush3.bf16.msra.mxu1 %v2989_v24 }
  0x39   : > { %2873 = vmatprep.subr.bf16.mxu0 %v2990_v25  ;;  %2905 = vmatprep.subr.bf16.mxu1 %v2990_v25 }
  0x3c   : > { %2874 = vmatpush3.bf16.msra.mxu0 %v2990_v25  ;;  %2906 = vmatpush3.bf16.msra.mxu1 %v2990_v25 }
  0xf1   : > { %v2825_v45 = vpop.f32.mrb[0].mxu0  ;;  %v2845_v59 = vpop.f32.mrb[0].mxu1 }
  0xf2   : > { %v449_v47 = vadd.f32 %v2825_v45, %v3240_v40  ;;  %v440_v48 = vpop.f32.mrb[1].mxu0  ;;  %v3263_v63 = vadd.f32 %v2845_v59, %v3240_v40  ;;  %v666_v0 = vpop.f32.mrb[1].mxu1 }
  0xf3   : > { %v441_v52 = vadd.f32 %v3240_v40, %v440_v48  ;;  %v2826_v53 = vpop.f32.mrb[2].mxu0  ;;  %v2846_v5 = vpop.f32.mrb[2].mxu1  ;;  %v3274_v9 = vadd.f32 %v3240_v40, %v666_v0 }
  0xf4   : > { %v505_v54 = vmax.f32 %v449_v47, 0.0  ;;  %v452_v57 = vadd.f32 %v2826_v53, %v3240_v40  ;;  %v443_v58 = vpop.f32.mrb[3].mxu0  ;;  %v731_v8 = vmax.f32 %v3263_v63, 0.0  ;;  %v3276_v10 = vpop.f32.mrb[3].mxu1  ;;  %v3283_v14 = vadd.f32 %v2846_v5, %v3240_v40 }
  0xf5   : > { %v503_v60 = vmax.f32 %v441_v52, 0.0  ;;  %v444_v61 = vadd.f32 %v3240_v40, %v443_v58 }
  0xf6   : > { %v3265_v1 = vmin.f32 %v505_v54, 6.0  ;;  %v506_v2 = vmax.f32 %v452_v57, 0.0 }
  0xf7   : > { %v519_v6 = vmin.f32 %v503_v60, 6.0  ;;  %v504_v7 = vmax.f32 %v444_v61, 0.0 }
  0xf8   : > { %v824_v11 = vrot.slane %v3265_v1, 7  ;;  %v893_v12 = vmul.f32 %v3227_v34, %v3265_v1  ;;  %v3287_v15 = vmul.f32 %v3251_v51, %v3265_v1  ;;  %v3296_v22 = vmin.f32 %v506_v2, 6.0 }
  0xf9   : > { %v823_v16 = vrot.slane %v519_v6, 7  ;;  %v891_v17 = vmul.f32 %v3227_v34, %v519_v6  ;;  %v922_v18 = vrot.slane %v519_v6, 1  ;;  %v2829_v19 = vpop.f32.mrb[4].mxu0  ;;  %v1102_v21 = vmul.f32 %v3251_v51, %v519_v6  ;;  %v3310_v42 = vpop.f32.mrb[4].mxu1 }
  0xfa   : > { %v3293_v20 = vsel %vm848_vm1, %v3223_v32, %v824_v11  ;;  %v520_v23 = vmin.f32 %v504_v7, 6.0  ;;  %v456_v24 = vpop.f32.mrb[5].mxu0  ;;  %v465_v29 = vadd.f32 %v2829_v19, %v3240_v40  ;;  %v832_v36 = vrot.slane %v3296_v22, 7  ;;  %v3317_v47 = vpop.f32.mrb[5].mxu1 }
  0xfb   : > { %v873_v25 = vmul.f32 %v3225_v33, %v3293_v20  ;;  %v1068_v26 = vmul.f32 %v3254_v55, %v3293_v20  ;;  %v858_v28 = vsel %vm848_vm1, %v3223_v32, %v823_v16  ;;  %v2830_v30 = vpop.f32.mrb[6].mxu0  ;;  %v457_v37 = vadd.f32 %v3240_v40, %v456_v24  ;;  %v3326_v53 = vpop.f32.mrb[6].mxu1 }
  0xfc   : > { %v871_v31 = vmul.f32 %v3225_v33, %v858_v28  ;;  %v1066_v35 = vmul.f32 %v3254_v55, %v858_v28  ;;  %v459_v41 = vpop.f32.mrb[7].mxu0  ;;  %v894_v44 = vmul.f32 %v3227_v34, %v3296_v22  ;;  %v831_v46 = vrot.slane %v520_v23, 7  ;;  %v3333_v60 = vpop.f32.mrb[7].mxu1 }
  0xfd   : > { %v3312_v43 = vadd.f32 %v893_v12, %v873_v25  ;;  %v3322_v50 = vsel %vm848_vm1, %v824_v11, %v832_v36  ;;  %v1105_v52 = vmul.f32 %v3251_v51, %v3296_v22  ;;  %v892_v58 = vmul.f32 %v3227_v34, %v520_v23 }
  0xfe   : > { %v907_v48 = vadd.f32 %v891_v17, %v871_v31  ;;  %v1082_v49 = vadd.f32 %v1066_v35, %v3256_v56  ;;  %v874_v54 = vmul.f32 %v3225_v33, %v3322_v50  ;;  %v850_v57 = vsel %vm848_vm1, %v823_v16, %v831_v46 }
  0xff   : > { %v930_v59 = vrot.slane %v520_v23, 1  ;;  %v872_v61 = vmul.f32 %v3225_v33, %v850_v57  ;;  %v1067_v0 = vmul.f32 %v3254_v55, %v850_v57  ;;  %v1069_v2 = vmul.f32 %v3254_v55, %v3322_v50 }
 0x100   : > { %v1103_v5 = vmul.f32 %v3251_v51, %v520_v23  ;;  %v3340_v6 = vadd.f32 %v894_v44, %v874_v54  ;;  %v509_v12 = vmax.f32 %v465_v29, 0.0  ;;  %v3354_v28 = vadd.f32 %v1102_v21, %v1082_v49 }
 0x101   : > { %v947_v7 = vsel %vm945_vm2, %v930_v59, %v3233_v38  ;;  %v955_v11 = vsel %vm945_vm2, %v922_v18, %v930_v59  ;;  %v3347_v16 = vpop.f32.mrb[8].mxu0  ;;  %v908_v17 = vadd.f32 %v892_v58, %v872_v61  ;;  %v1083_v25 = vadd.f32 %v1067_v0, %v3256_v56  ;;  %v3364_v58 = vpop.f32.mrb[8].mxu1 }
 0x102   : > { %v968_v19 = vmul.f32 %v3235_v39, %v955_v11  ;;  %v969_v24 = vmul.f32 %v3235_v39, %v947_v7  ;;  %v3352_v23 = vpop.f32.mrb[9].mxu0  ;;  %v1179_v31 = vmul.f32 %v3268_v3, %v947_v7  ;;  %v3357_v35 = vmin.f32 %v509_v12, 6.0  ;;  %v3373_v59 = vpop.f32.mrb[9].mxu1 }
 0x103   : > { %v507_v36 = vmax.f32 %v457_v37, 0.0  ;;  %v3359_v18 = vpop.f32.mrb[10].mxu0  ;;  %v1119_v46 = vadd.f32 %v1103_v5, %v1083_v25  ;;  %v468_v54 = vadd.f32 %v2830_v30, %v3240_v40  ;;  %v3367_v56 = vmul.f32 %v3268_v3, %v955_v11  ;;  %v3379_v5 = vpop.f32.mrb[10].mxu1 }
 0x104   : > { %4856 = vst [vmem:[#allocation7_spill] sm:$0xff] %v3357_v35  ;;  %v984_v29 = vadd.f32 %v968_v19, %v907_v48  ;;  %v985_v44 = vadd.f32 %v969_v24, %v908_v17  ;;  %v3362_v57 = vpop.f32.mrb[11].mxu0  ;;  %v826_v21 = vrot.slane %v3357_v35, 7  ;;  %v897_v49 = vmul.f32 %v3227_v34, %v3357_v35 }
 0x105   : > { %v3377_v30 = vadd.f32 %v1179_v31, %v1119_v46  ;;  %v523_v0 = vmin.f32 %v507_v36, 6.0  ;;  %v510_v11 = vmax.f32 %v468_v54, 0.0  ;;  %v460_v12 = vadd.f32 %v3240_v40, %v459_v41 }
 0x106   : > { %v3375_v48 = vadd.f32 %v1068_v26, %v984_v29  ;;  %v1085_v61 = vadd.f32 %v1069_v2, %v985_v44  ;;  %v3384_v7 = vsel %vm848_vm1, %v3223_v32, %v826_v21  ;;  %v3389_v17 = vmin.f32 %v731_v8, 6.0  ;;  %v3391_v26 = vpop.f32.mrb[11].mxu1 }
 0x107   : > { %4857 = vst [vmem:[#allocation8_spill] sm:$0xff] %v3377_v30  ;;  %4858 = vst [vmem:[#allocation9_spill] sm:$0xff] %v3384_v7  ;;  %v877_v19 = vmul.f32 %v3225_v33, %v3384_v7  ;;  %v3399_v24 = vmul.f32 %v3251_v51, %v3357_v35  ;;  %v825_v25 = vrot.slane %v523_v0, 7  ;;  %v3403_v31 = vmul.f32 %v3254_v55, %v3384_v7 }
 0x108   : > { %4859 = vst [vmem:[#allocation10_spill] sm:$0xff] %v3389_v17  ;;  %v3393_v2 = vadd.f32 %v1105_v52, %v1085_v61  ;;  %v895_v63 = vmul.f32 %v3227_v34, %v523_v0  ;;  %v924_v8 = vrot.slane %v523_v0, 1  ;;  %v3407_v41 = vmul.f32 %v3251_v51, %v523_v0 }
 0x109   : > { %4860 = vst [vmem:[#allocation11_spill] sm:$0xff] %v3399_v24  ;;  %4861 = vst [vmem:[#allocation12_spill] sm:$0xff] %v3403_v31  ;;  %v3409_v52 = vpop.f32.mrb[12].mxu0  ;;  %v860_v36 = vsel %vm848_vm1, %v3223_v32, %v825_v25  ;;  %v3415_v29 = vmul.f32 %v3260_v62, %v523_v0  ;;  %v3417_v44 = vmin.f32 %v510_v11, 6.0  ;;  %v508_v46 = vmax.f32 %v460_v12, 0.0 }
 0x10a   : > { %4862 = vst [vmem:[#allocation13_spill] sm:$0xff] %v3407_v41  ;;  %v3419_v54 = vpop.f32.mrb[13].mxu0  ;;  %v3421_v61 = vadd.f32 %v897_v49, %v877_v19  ;;  %v875_v37 = vmul.f32 %v3225_v33, %v860_v36  ;;  %v3425_v13 = vmul.f32 %v3254_v55, %v860_v36  ;;  %v3431_v31 = vmul.f32 %v3270_v4, %v860_v36  ;;  %v3439_v19 = vpop.f32.mrb[12].mxu1 }
 0x10b   : > { %4863 = vst [vmem:[#allocation14_spill] sm:$0xff] %v3415_v29  ;;  %4864 = vst [vmem:[#allocation15_spill] sm:$0xff] %v3417_v44  ;;  %v3428_v24 = vpop.f32.mrb[14].mxu0  ;;  %v834_v0 = vrot.slane %v3417_v44, 7  ;;  %v898_v11 = vmul.f32 %v3227_v34, %v3417_v44  ;;  %v3443_v7 = vmul.f32 %v3251_v51, %v3417_v44  ;;  %v524_v45 = vmin.f32 %v508_v46, 6.0  ;;  %v3454_v49 = vpop.f32.mrb[13].mxu1 }
 0x10c   : > { %4865 = vst [vmem:[#allocation16_spill] sm:$0xff] %v3421_v61  ;;  %4866 = vst [vmem:[#allocation17_spill] sm:$0xff] %v3425_v13  ;;  %v3437_v12 = vpop.f32.mrb[15].mxu0  ;;  %v4868_v41 = vrot.slane %v3389_v17, 7  ;;  %v1785_v13 = vmul.f32 %v3227_v34, %v3389_v17  ;;  %v3456_v61 = vadd.f32 %v895_v63, %v875_v37  ;;  %v3465_v44 = vpop.f32.mrb[14].mxu1 }
 0x10d   : > { %4867 = vst [vmem:[#allocation18_spill] sm:$0xff] %v3443_v7  ;;  %v3460_v35 = vsel %vm848_vm1, %v826_v21, %v834_v0  ;;  %4872 = vst [vmem:[#allocation22_spill] sm:$0xff] %v3465_v44  ;;  %v833_v37 = vrot.slane %v524_v45, 7  ;;  %v3477_v21 = vpop.f32.mrb[15].mxu1  ;;  %v896_v0 = vmul.f32 %v3227_v34, %v524_v45  ;;  %v3481_v7 = vmul.f32 %v3251_v51, %v524_v45 }
 0x10e   : > { %v3450_v36 = vsel %vm848_vm1, %v3223_v32, %v4868_v41  ;;  %4870 = vst [vmem:[#allocation20_spill] sm:$0xff] %v3456_v61  ;;  %4871 = vst [vmem:[#allocation21_spill] sm:$0xff] %v3460_v35  ;;  %v878_v41 = vmul.f32 %v3225_v33, %v3460_v35  ;;  %v3471_v29 = vmul.f32 %v3254_v55, %v3460_v35  ;;  %v932_v61 = vrot.slane %v524_v45, 1 }
 0x10f   : > { %4869 = vst [vmem:[#allocation19_spill] sm:$0xff] %v3450_v36  ;;  %v1769_v46 = vmul.f32 %v3450_v36, %v3225_v33  ;;  %v3475_v63 = vmul.f32 %v3450_v36, %v3254_v55  ;;  %4875 = vst [vmem:[#allocation25_spill] sm:$0xff] %v3477_v21  ;;  %v3484_v44 = vmul.f32 %v3260_v62, %v524_v45  ;;  %v729_v36 = vmax.f32 %v3274_v9, 0.0 }
 0x110   : > { %4873 = vst [vmem:[#allocation23_spill] sm:$0xff] %v3471_v29  ;;  %4876 = vst [vmem:[#allocation26_spill] sm:$0xff] %v3481_v7  ;;  %v3486_v30 = vadd.f32 %v898_v11, %v878_v41  ;;  %v852_v29 = vsel %vm848_vm1, %v825_v25, %v833_v37  ;;  %v3497_v21 = vsel %vm945_vm2, %v932_v61, %v3233_v38 }
 0x111   : > { %4874 = vst [vmem:[#allocation24_spill] sm:$0xff] %v3475_v63  ;;  %v3490_v35 = vadd.f32 %v1785_v13, %v1769_v46  ;;  %v876_v63 = vmul.f32 %v3225_v33, %v852_v29  ;;  %v3501_v45 = vsel %vm945_vm2, %v924_v8, %v932_v61  ;;  %v3505_v11 = vmul.f32 %v3251_v51, %v3389_v17 }
 0x112   : > { %4877 = vst [vmem:[#allocation27_spill] sm:$0xff] %v3486_v30  ;;  %v3509_v13 = vmul.f32 %v3235_v39, %v3501_v45  ;;  %v973_v9 = vmul.f32 %v3235_v39, %v3497_v21  ;;  %v3514_v25 = vmul.f32 %v3254_v55, %v852_v29  ;;  %v3516_v46 = vmin.f32 %v729_v36, 6.0 }
 0x113   : > { %4878 = vst [vmem:[#allocation28_spill] sm:$0xff] %v3490_v35  ;;  %4879 = vst [vmem:[#allocation29_spill] sm:$0xff] %v3505_v11  ;;  %v912_v41 = vadd.f32 %v896_v0, %v876_v63  ;;  %v732_v8 = vmax.f32 %v3283_v14, 0.0  ;;  %v670_v61 = vadd.f32 %v3240_v40, %v3276_v10  ;;  %v481_v37 = vadd.f32 %v3347_v16, %v3240_v40 }
 0x114   : > { %4880 = vst [vmem:[#allocation30_spill] sm:$0xff] %v3509_v13  ;;  %4881 = vst [vmem:[#allocation31_spill] sm:$0xff] %v3514_v25  ;;  %v3524_v11 = vmul.f32 %v3270_v4, %v852_v29  ;;  %v1242_v35 = vrot.slane %v3516_v46, 7  ;;  %v1354_v13 = vrot.slane %v3516_v46, 1  ;;  %v1783_v36 = vmul.f32 %v3227_v34, %v3516_v46 }
 0x115   : > { %4882 = vst [vmem:[#allocation32_spill] sm:$0xff] %v3516_v46  ;;  %v3530_v7 = vadd.f32 %v973_v9, %v912_v41  ;;  %v3532_v63 = vmin.f32 %v732_v8, 6.0  ;;  %v730_v14 = vmax.f32 %v670_v61, 0.0  ;;  %v513_v0 = vmax.f32 %v481_v37, 0.0 }
 0x116   : > { %v3537_v10 = vsel %vm848_vm1, %v3223_v32, %v1242_v35  ;;  %v3541_v16 = vmul.f32 %v3251_v51, %v3516_v46  ;;  %v473_v29 = vadd.f32 %v3240_v40, %v3352_v23  ;;  %v484_v9 = vadd.f32 %v3359_v18, %v3240_v40 }
 0x117   : > { %4883 = vst [vmem:[#allocation33_spill] sm:$0xff] %v3530_v7  ;;  %4884 = vst [vmem:[#allocation34_spill] sm:$0xff] %v3532_v63  ;;  %v1767_v41 = vmul.f32 %v3537_v10, %v3225_v33  ;;  %v3551_v8 = vmul.f32 %v3537_v10, %v3254_v55  ;;  %v1735_v61 = vrot.slane %v3532_v63, 7  ;;  %v691_v37 = vadd.f32 %v3310_v42, %v3240_v40 }
 0x118   : > { %4885 = vst [vmem:[#allocation35_spill] sm:$0xff] %v3537_v10  ;;  %4886 = vst [vmem:[#allocation36_spill] sm:$0xff] %v3541_v16  ;;  %v1786_v46 = vmul.f32 %v3227_v34, %v3532_v63  ;;  %v3559_v16 = vmin.f32 %v730_v14, 6.0  ;;  %v3561_v18 = vmin.f32 %v513_v0, 6.0  ;;  %v4890_v25 = vrot.slane %v3389_v17, 7 }
 0x119   : > { %4887 = vst [vmem:[#allocation37_spill] sm:$0xff] %v3551_v8  ;;  %v1799_v7 = vadd.f32 %v1783_v36, %v1767_v41  ;;  %v3571_v8 = vmul.f32 %v3251_v51, %v3532_v63  ;;  %v511_v42 = vmax.f32 %v473_v29, 0.0  ;;  %v514_v23 = vmax.f32 %v484_v9, 0.0 }
 0x11a   : > { %4888 = vst [vmem:[#allocation38_spill] sm:$0xff] %v3559_v16  ;;  %4889 = vst [vmem:[#allocation39_spill] sm:$0xff] %v3561_v18  ;;  %v3567_v10 = vsel %vm848_vm1, %v4890_v25, %v1735_v61  ;;  %v1250_v14 = vrot.slane %v3559_v16, 7  ;;  %v1362_v0 = vrot.slane %v3559_v16, 1  ;;  %v1784_v25 = vmul.f32 %v3227_v34, %v3559_v16 }
 0x11b   : > { %4891 = vst [vmem:[#allocation40_spill] sm:$0xff] %v3567_v10  ;;  %4892 = vst [vmem:[#allocation41_spill] sm:$0xff] %v3571_v8  ;;  %v1770_v30 = vmul.f32 %v3567_v10, %v3225_v33  ;;  %v1952_v36 = vmul.f32 %v3567_v10, %v3254_v55  ;;  %v3583_v41 = vmul.f32 %v3251_v51, %v3559_v16  ;;  %v828_v29 = vrot.slane %v3561_v18, 7 }
 0x11c   : > { %v3590_v8 = vsel %vm848_vm1, %v1242_v35, %v1250_v14  ;;  %v3595_v9 = vsel %vm945_vm2, %v1362_v0, %v3233_v38  ;;  %v3599_v10 = vsel %vm945_vm2, %v1354_v13, %v1362_v0  ;;  %v901_v35 = vmul.f32 %v3227_v34, %v3561_v18 }
 0x11d   : > { %4893 = vst [vmem:[#allocation42_spill] sm:$0xff] %v3583_v41  ;;  %v3586_v61 = vadd.f32 %v1786_v46, %v1770_v30  ;;  %4895 = vst [vmem:[#allocation44_spill] sm:$0xff] %v3590_v8  ;;  %v1768_v16 = vmul.f32 %v3590_v8, %v3225_v33  ;;  %v1855_v30 = vmul.f32 %v3599_v10, %v3235_v39  ;;  %v3619_v41 = vmin.f32 %v511_v42, 6.0 }
 0x11e   : > { %4896 = vst [vmem:[#allocation45_spill] sm:$0xff] %v3595_v9  ;;  %4897 = vst [vmem:[#allocation46_spill] sm:$0xff] %v3599_v10  ;;  %v1856_v46 = vmul.f32 %v3595_v9, %v3235_v39  ;;  %v3611_v14 = vmul.f32 %v3590_v8, %v3254_v55  ;;  %v3616_v13 = vsel %vm848_vm1, %v3223_v32, %v828_v29  ;;  %v735_v0 = vmax.f32 %v691_v37, 0.0 }
 0x11f   : > { %4894 = vst [vmem:[#allocation43_spill] sm:$0xff] %v3586_v61  ;;  %4899 = vst [vmem:[#allocation48_spill] sm:$0xff] %v3616_v13  ;;  %v1800_v10 = vadd.f32 %v1784_v25, %v1768_v16  ;;  %v3621_v61 = vadd.f32 %v1855_v30, %v1799_v7  ;;  %v881_v9 = vmul.f32 %v3225_v33, %v3616_v13  ;;  %v3641_v30 = vmin.f32 %v514_v23, 6.0 }
 0x120   : > { %4898 = vst [vmem:[#allocation47_spill] sm:$0xff] %v3611_v14  ;;  %v3627_v17 = vmul.f32 %v3251_v51, %v3561_v18  ;;  %v3631_v8 = vmul.f32 %v3254_v55, %v3616_v13  ;;  %v827_v14 = vrot.slane %v3619_v41, 7  ;;  %v899_v42 = vmul.f32 %v3227_v34, %v3619_v41 }
 0x121   : > { %4900 = vst [vmem:[#allocation49_spill] sm:$0xff] %v3621_v61  ;;  %v1872_v7 = vadd.f32 %v1856_v46, %v1800_v10  ;;  %v3639_v25 = vmul.f32 %v3251_v51, %v3619_v41  ;;  %v3643_v61 = vadd.f32 %v901_v35, %v881_v9  ;;  %v683_v10 = vadd.f32 %v3240_v40, %v3317_v47 }
 0x122   : > { %4901 = vst [vmem:[#allocation50_spill] sm:$0xff] %v3627_v17  ;;  %4902 = vst [vmem:[#allocation51_spill] sm:$0xff] %v3631_v8  ;;  %v3648_v63 = vsel %vm848_vm1, %v3223_v32, %v827_v14  ;;  %v476_v17 = vadd.f32 %v3240_v40, %v3362_v57  ;;  %v836_v37 = vrot.slane %v3641_v30, 7  ;;  %v694_v9 = vadd.f32 %v3326_v53, %v3240_v40 }
 0x123   : > { %4903 = vst [vmem:[#allocation52_spill] sm:$0xff] %v3639_v25  ;;  %4904 = vst [vmem:[#allocation53_spill] sm:$0xff] %v3643_v61  ;;  %v3654_v46 = vadd.f32 %v1952_v36, %v1872_v7  ;;  %v879_v23 = vmul.f32 %v3225_v33, %v3648_v63  ;;  %v3663_v35 = vmul.f32 %v3254_v55, %v3648_v63  ;;  %v3668_v47 = vmin.f32 %v735_v0, 6.0 }
 0x124   : > { %v902_v57 = vmul.f32 %v3227_v34, %v3641_v30  ;;  %v3672_v36 = vsel %vm848_vm1, %v828_v29, %v836_v37  ;;  %v3676_v7 = vmul.f32 %v3251_v51, %v3641_v30  ;;  %v512_v53 = vmax.f32 %v476_v17, 0.0 }
 0x125   : > { %4905 = vst [vmem:[#allocation54_spill] sm:$0xff] %v3654_v46  ;;  %4906 = vst [vmem:[#allocation55_spill] sm:$0xff] %v3663_v35  ;;  %v733_v46 = vmax.f32 %v683_v10, 0.0  ;;  %v3678_v8 = vadd.f32 %v899_v42, %v879_v23  ;;  %v882_v13 = vmul.f32 %v3225_v33, %v3672_v36  ;;  %v3684_v16 = vmul.f32 %v3254_v55, %v3672_v36 }
 0x126   : > { %4907 = vst [vmem:[#allocation56_spill] sm:$0xff] %v3668_v47  ;;  %4908 = vst [vmem:[#allocation57_spill] sm:$0xff] %v3672_v36  ;;  %v1729_v0 = vrot.slane %v3668_v47, 7  ;;  %v1789_v29 = vmul.f32 %v3227_v34, %v3668_v47  ;;  %v3690_v25 = vmin.f32 %v512_v53, 6.0  ;;  %v3701_v23 = vmul.f32 %v3251_v51, %v3668_v47 }
 0x127   : > { %4909 = vst [vmem:[#allocation58_spill] sm:$0xff] %v3676_v7  ;;  %4910 = vst [vmem:[#allocation59_spill] sm:$0xff] %v3684_v16  ;;  %v749_v17 = vmin.f32 %v733_v46, 6.0  ;;  %v3692_v10 = vadd.f32 %v902_v57, %v882_v13  ;;  %v736_v7 = vmax.f32 %v694_v9, 0.0  ;;  %v686_v46 = vadd.f32 %v3240_v40, %v3333_v60 }
 0x128   : > { %v3697_v42 = vsel %vm848_vm1, %v3223_v32, %v1729_v0  ;;  %4913 = vst [vmem:[#allocation62_spill] sm:$0xff] %v3701_v23  ;;  %v835_v13 = vrot.slane %v3690_v25, 7  ;;  %v900_v57 = vmul.f32 %v3227_v34, %v3690_v25  ;;  %v3717_v9 = vmul.f32 %v3251_v51, %v3690_v25 }
 0x129   : > { %4911 = vst [vmem:[#allocation60_spill] sm:$0xff] %v3692_v10  ;;  %4912 = vst [vmem:[#allocation61_spill] sm:$0xff] %v3697_v42  ;;  %v1773_v16 = vmul.f32 %v3697_v42, %v3225_v33  ;;  %v3707_v53 = vmul.f32 %v3697_v42, %v3254_v55  ;;  %v1728_v23 = vrot.slane %v749_v17, 7  ;;  %v1787_v42 = vmul.f32 %v3227_v34, %v749_v17 }
 0x12a   : > { %4915 = vst [vmem:[#allocation64_spill] sm:$0xff] %v3717_v9  ;;  %v1816_v36 = vrot.slane %v749_v17, 1  ;;  %v497_v10 = vadd.f32 %v3409_v52, %v3240_v40  ;;  %v489_v35 = vadd.f32 %v3240_v40, %v3419_v54 }
 0x12b   : > { %4914 = vst [vmem:[#allocation63_spill] sm:$0xff] %v3707_v53  ;;  %v3719_v47 = vadd.f32 %v1789_v29, %v1773_v16  ;;  %v3723_v53 = vsel %vm848_vm1, %v827_v14, %v835_v13  ;;  %v1760_v9 = vsel %vm848_vm1, %v3223_v32, %v1728_v23  ;;  %v3736_v16 = vmul.f32 %v3251_v51, %v749_v17 }
 0x12c   : > { %v880_v60 = vmul.f32 %v3225_v33, %v3723_v53  ;;  %v3730_v37 = vmul.f32 %v3254_v55, %v3723_v53  ;;  %v1771_v14 = vmul.f32 %v1760_v9, %v3225_v33  ;;  %v3740_v29 = vmul.f32 %v1760_v9, %v3254_v55 }
 0x12d   : > { %4916 = vst [vmem:[#allocation65_spill] sm:$0xff] %v3719_v47  ;;  %4918 = vst [vmem:[#allocation67_spill] sm:$0xff] %v3736_v16  ;;  %v3743_v13 = vmul.f32 %v3260_v62, %v749_v17  ;;  %v3745_v47 = vmin.f32 %v736_v7, 6.0  ;;  %v3756_v18 = vmul.f32 %v1760_v9, %v3270_v4  ;;  %v707_v9 = vadd.f32 %v3364_v58, %v3240_v40 }
 0x12e   : > { %4917 = vst [vmem:[#allocation66_spill] sm:$0xff] %v3730_v37  ;;  %4919 = vst [vmem:[#allocation68_spill] sm:$0xff] %v3740_v29  ;;  %v3747_v61 = vadd.f32 %v900_v57, %v880_v60  ;;  %v734_v37 = vmax.f32 %v686_v46, 0.0  ;;  %v3753_v16 = vadd.f32 %v1787_v42, %v1771_v14  ;;  %v517_v46 = vmax.f32 %v497_v10, 0.0 }
 0x12f   : > { %4920 = vst [vmem:[#allocation69_spill] sm:$0xff] %v3743_v13  ;;  %4921 = vst [vmem:[#allocation70_spill] sm:$0xff] %v3745_v47  ;;  %v1737_v29 = vrot.slane %v3745_v47, 7  ;;  %v1790_v7 = vmul.f32 %v3227_v34, %v3745_v47  ;;  %v515_v60 = vmax.f32 %v489_v35, 0.0  ;;  %v3768_v54 = vmul.f32 %v3251_v51, %v3745_v47 }
 0x130   : > { %4922 = vst [vmem:[#allocation71_spill] sm:$0xff] %v3753_v16  ;;  %4923 = vst [vmem:[#allocation72_spill] sm:$0xff] %v3756_v18  ;;  %v750_v57 = vmin.f32 %v734_v37, 6.0  ;;  %v500_v42 = vadd.f32 %v3428_v24, %v3240_v40  ;;  %v3786_v24 = vmin.f32 %v517_v46, 6.0  ;;  %v710_v18 = vadd.f32 %v3379_v5, %v3240_v40 }
 0x131   : > { %v3764_v52 = vsel %vm848_vm1, %v1729_v0, %v1737_v29  ;;  %4925 = vst [vmem:[#allocation74_spill] sm:$0xff] %v3768_v54  ;;  %v492_v0 = vadd.f32 %v3240_v40, %v3437_v12 }
 0x132   : > { %4924 = vst [vmem:[#allocation73_spill] sm:$0xff] %v3764_v52  ;;  %v1774_v14 = vmul.f32 %v3764_v52, %v3225_v33  ;;  %v3778_v35 = vmul.f32 %v3764_v52, %v3254_v55  ;;  %v1736_v37 = vrot.slane %v750_v57, 7  ;;  %v1788_v10 = vmul.f32 %v3227_v34, %v750_v57 }
 0x133   : > { %v1824_v29 = vrot.slane %v750_v57, 1  ;;  %v3784_v17 = vmul.f32 %v3251_v51, %v750_v57  ;;  %v3793_v16 = vmul.f32 %v3260_v62, %v750_v57 }
 0x134   : > { %4926 = vst [vmem:[#allocation75_spill] sm:$0xff] %v3778_v35  ;;  %v3788_v58 = vadd.f32 %v1790_v7, %v1774_v14  ;;  %v1752_v54 = vsel %vm848_vm1, %v1728_v23, %v1736_v37  ;;  %v3795_v35 = vmin.f32 %v515_v60, 6.0  ;;  %v518_v7 = vmax.f32 %v500_v42, 0.0 }
 0x135   : > { %4927 = vst [vmem:[#allocation76_spill] sm:$0xff] %v3784_v17  ;;  %4929 = vst [vmem:[#allocation78_spill] sm:$0xff] %v3793_v16  ;;  %v1772_v12 = vmul.f32 %v1752_v54, %v3225_v33  ;;  %v3801_v52 = vsel %vm945_vm2, %v1824_v29, %v3233_v38  ;;  %v3805_v46 = vsel %vm945_vm2, %v1816_v36, %v1824_v29  ;;  %v1029_v14 = vrot.slane %v3786_v24, 7 }
 0x136   : > { %4928 = vst [vmem:[#allocation77_spill] sm:$0xff] %v3788_v58  ;;  %4930 = vst [vmem:[#allocation79_spill] sm:$0xff] %v3801_v52  ;;  %v3809_v23 = vmul.f32 %v3805_v46, %v3235_v39  ;;  %v1860_v57 = vmul.f32 %v3801_v52, %v3235_v39  ;;  %v3814_v60 = vmul.f32 %v1752_v54, %v3254_v55  ;;  %v3849_v52 = vmin.f32 %v518_v7, 6.0 }
 0x137   : > { %4931 = vst [vmem:[#allocation80_spill] sm:$0xff] %v3805_v46  ;;  %v1804_v37 = vadd.f32 %v1788_v10, %v1772_v12  ;;  %v3818_v17 = vmul.f32 %v1752_v54, %v3270_v4  ;;  %v3822_v36 = vmul.f32 %v3251_v51, %v3786_v24  ;;  %v3828_v29 = vsel %vm848_vm1, %v3223_v32, %v1029_v14 }
 0x138   : > { %4932 = vst [vmem:[#allocation81_spill] sm:$0xff] %v3809_v23  ;;  %4933 = vst [vmem:[#allocation82_spill] sm:$0xff] %v3814_v60  ;;  %v1781_v23 = vmul.f32 %v3227_v34, %v3786_v24  ;;  %v829_v60 = vrot.slane %v3795_v35, 7  ;;  %v903_v54 = vmul.f32 %v3227_v34, %v3795_v35  ;;  %v3839_v12 = vmul.f32 %v3254_v55, %v3828_v29 }
 0x139   : > { %4934 = vst [vmem:[#allocation83_spill] sm:$0xff] %v3818_v17  ;;  %4935 = vst [vmem:[#allocation84_spill] sm:$0xff] %v3822_v36  ;;  %v3835_v10 = vadd.f32 %v1860_v57, %v1804_v37  ;;  %v1765_v42 = vmul.f32 %v3828_v29, %v3225_v33  ;;  %v739_v46 = vmax.f32 %v707_v9, 0.0  ;;  %v516_v16 = vmax.f32 %v492_v0, 0.0 }
 0x13a   : > { %4936 = vst [vmem:[#allocation85_spill] sm:$0xff] %v3828_v29  ;;  %4938 = vst [vmem:[#allocation87_spill] sm:$0xff] %v3839_v12  ;;  %v3847_v47 = vsel %vm848_vm1, %v3223_v32, %v829_v60  ;;  %v699_v58 = vadd.f32 %v3240_v40, %v3373_v59  ;;  %v1037_v7 = vrot.slane %v3849_v52, 7  ;;  %v3868_v9 = vmul.f32 %v3251_v51, %v3849_v52 }
 0x13b   : > { %4937 = vst [vmem:[#allocation86_spill] sm:$0xff] %v3835_v10  ;;  %v3851_v57 = vadd.f32 %v1781_v23, %v1765_v42  ;;  %v883_v37 = vmul.f32 %v3225_v33, %v3847_v47  ;;  %v3857_v10 = vmul.f32 %v3251_v51, %v3795_v35  ;;  %v3863_v13 = vmul.f32 %v3254_v55, %v3847_v47 }
 0x13c   : > { %4940 = vst [vmem:[#allocation89_spill] sm:$0xff] %v3868_v9  ;;  %v1782_v42 = vmul.f32 %v3227_v34, %v3849_v52  ;;  %v3875_v36 = vmin.f32 %v739_v46, 6.0  ;;  %v3877_v59 = vmin.f32 %v516_v16, 6.0  ;;  %v3881_v12 = vsel %vm848_vm1, %v1029_v14, %v1037_v7 }
 0x13d   : > { %4939 = vst [vmem:[#allocation88_spill] sm:$0xff] %v3851_v57  ;;  %v3871_v23 = vadd.f32 %v903_v54, %v883_v37  ;;  %4942 = vst [vmem:[#allocation91_spill] sm:$0xff] %v3881_v12  ;;  %v737_v17 = vmax.f32 %v699_v58, 0.0  ;;  %v702_v0 = vadd.f32 %v3240_v40, %v3391_v26  ;;  %v3889_v54 = vmul.f32 %v3254_v55, %v3881_v12 }
 0x13e   : > { %4941 = vst [vmem:[#allocation90_spill] sm:$0xff] %v3875_v36  ;;  %v1766_v46 = vmul.f32 %v3881_v12, %v3225_v33  ;;  %v1731_v16 = vrot.slane %v3875_v36, 7  ;;  %v723_v14 = vadd.f32 %v3439_v19, %v3240_v40  ;;  %v1793_v58 = vmul.f32 %v3227_v34, %v3875_v36 }
 0x13f   : > { %4943 = vst [vmem:[#allocation92_spill] sm:$0xff] %v3889_v54  ;;  %v3901_v26 = vmul.f32 %v3251_v51, %v3875_v36  ;;  %v837_v37 = vrot.slane %v3877_v59, 7  ;;  %v904_v19 = vmul.f32 %v3227_v34, %v3877_v59  ;;  %v738_v57 = vmax.f32 %v702_v0, 0.0 }
 0x140   : > { %v3904_v7 = vadd.f32 %v1782_v42, %v1766_v46  ;;  %v3909_v9 = vsel %vm848_vm1, %v3223_v32, %v1731_v16  ;;  %v3922_v42 = vmul.f32 %v3251_v51, %v3877_v59  ;;  %v3924_v46 = vmin.f32 %v737_v17, 6.0 }
 0x141   : > { %4944 = vst [vmem:[#allocation93_spill] sm:$0xff] %v3901_v26  ;;  %4946 = vst [vmem:[#allocation95_spill] sm:$0xff] %v3909_v9  ;;  %v1777_v5 = vmul.f32 %v3909_v9, %v3225_v33  ;;  %v3918_v26 = vsel %vm848_vm1, %v829_v60, %v837_v37  ;;  %v3928_v36 = vmul.f32 %v3909_v9, %v3254_v55 }
 0x142   : > { %4945 = vst [vmem:[#allocation94_spill] sm:$0xff] %v3904_v7  ;;  %4947 = vst [vmem:[#allocation96_spill] sm:$0xff] %v3922_v42  ;;  %v884_v54 = vmul.f32 %v3225_v33, %v3918_v26  ;;  %v740_v7 = vmax.f32 %v710_v18, 0.0  ;;  %v3936_v60 = vmul.f32 %v3254_v55, %v3918_v26  ;;  %v1730_v37 = vrot.slane %v3924_v46, 7 }
 0x143   : > { %4948 = vst [vmem:[#allocation97_spill] sm:$0xff] %v3924_v46  ;;  %4949 = vst [vmem:[#allocation98_spill] sm:$0xff] %v3928_v36  ;;  %v3932_v12 = vadd.f32 %v1793_v58, %v1777_v5  ;;  %v1791_v17 = vmul.f32 %v3227_v34, %v3924_v46  ;;  %v3946_v42 = vmin.f32 %v738_v57, 6.0  ;;  %v3955_v0 = vmul.f32 %v3251_v51, %v3924_v46 }
 0x144   : > { %v3941_v29 = vadd.f32 %v904_v19, %v884_v54  ;;  %v3944_v9 = vmin.f32 %v740_v7, 6.0  ;;  %v3951_v18 = vsel %vm848_vm1, %v3223_v32, %v1730_v37  ;;  %v743_v58 = vmax.f32 %v723_v14, 0.0 }
 0x145   : > { %4950 = vst [vmem:[#allocation99_spill] sm:$0xff] %v3932_v12  ;;  %4952 = vst [vmem:[#allocation101_spill] sm:$0xff] %v3946_v42  ;;  %v715_v54 = vadd.f32 %v3240_v40, %v3454_v49  ;;  %v1775_v5 = vmul.f32 %v3951_v18, %v3225_v33  ;;  %v3963_v57 = vmul.f32 %v3951_v18, %v3254_v55  ;;  %v4956_v19 = vrot.slane %v3296_v22, 1 }
 0x146   : > { %4951 = vst [vmem:[#allocation100_spill] sm:$0xff] %v3944_v9  ;;  %4953 = vst [vmem:[#allocation102_spill] sm:$0xff] %v3951_v18  ;;  %v1739_v7 = vrot.slane %v3944_v9, 7  ;;  %v1794_v14 = vmul.f32 %v3227_v34, %v3944_v9  ;;  %v1738_v12 = vrot.slane %v3946_v42, 7 }
 0x147   : > { %4954 = vst [vmem:[#allocation103_spill] sm:$0xff] %v3955_v0  ;;  %4955 = vst [vmem:[#allocation104_spill] sm:$0xff] %v3963_v57  ;;  %v948_v36 = vsel %vm945_vm2, %v4956_v19, %v3233_v38  ;;  %v3976_v0 = vmul.f32 %v3251_v51, %v3944_v9  ;;  %v3979_v57 = vadd.f32 %v1791_v17, %v1775_v5  ;;  %v3998_v5 = vmin.f32 %v743_v58, 6.0 }
 0x148   : > { %v3983_v18 = vsel %vm848_vm1, %v1731_v16, %v1739_v7  ;;  %v1792_v19 = vmul.f32 %v3227_v34, %v3946_v42  ;;  %v3992_v9 = vsel %vm848_vm1, %v1730_v37, %v1738_v12  ;;  %v3996_v17 = vmul.f32 %v3251_v51, %v3946_v42 }
 0x149   : > { %4957 = vst [vmem:[#allocation105_spill] sm:$0xff] %v3976_v0  ;;  %4958 = vst [vmem:[#allocation106_spill] sm:$0xff] %v3979_v57  ;;  %v1778_v49 = vmul.f32 %v3983_v18, %v3225_v33  ;;  %v4002_v16 = vmul.f32 %v3983_v18, %v3254_v55  ;;  %v1776_v7 = vmul.f32 %v3992_v9, %v3225_v33  ;;  %v741_v46 = vmax.f32 %v715_v54, 0.0 }
 0x14a   : > { %4959 = vst [vmem:[#allocation107_spill] sm:$0xff] %v3983_v18  ;;  %4960 = vst [vmem:[#allocation108_spill] sm:$0xff] %v3996_v17  ;;  %v4963_v0 = vrot.slane %v3296_v22, 1  ;;  %v4964_v57 = vrot.slane %v3265_v1, 1  ;;  %v4016_v58 = vmul.f32 %v3992_v9, %v3254_v55  ;;  %v4844_v18 = vrot.slane %v3998_v5, 7 }
 0x14b   : > { %4961 = vst [vmem:[#allocation109_spill] sm:$0xff] %v3998_v5  ;;  %4962 = vst [vmem:[#allocation110_spill] sm:$0xff] %v4002_v16  ;;  %v4012_v37 = vadd.f32 %v1794_v14, %v1778_v49  ;;  %v4021_v16 = vmul.f32 %v3251_v51, %v3998_v5  ;;  %v4023_v54 = vadd.f32 %v1792_v19, %v1776_v7  ;;  %v4026_v42 = vmin.f32 %v741_v46, 6.0 }
 0x14c   : > { %v956_v12 = vsel %vm945_vm2, %v4964_v57, %v4963_v0  ;;  %4966 = vst [vmem:[#allocation112_spill] sm:$0xff] %v4016_v58  ;;  %v4034_v57 = vsel %vm848_vm1, %v3223_v32, %v4844_v18  ;;  %v4038_v14 = vmul.f32 %v3260_v62, %v3998_v5  ;;  %v971_v49 = vmul.f32 %v3235_v39, %v948_v36 }
 0x14d   : > { %4965 = vst [vmem:[#allocation111_spill] sm:$0xff] %v4012_v37  ;;  %4967 = vst [vmem:[#allocation113_spill] sm:$0xff] %v4021_v16  ;;  %v970_v0 = vmul.f32 %v3235_v39, %v956_v12  ;;  %v1120_v19 = vadd.f32 %v3287_v15, %v3375_v48  ;;  %v4045_v46 = vmul.f32 %v4034_v57, %v3254_v55  ;;  %v4845_v7 = vrot.slane %v4026_v42, 7 }
 0x14e   : > { %4968 = vst [vmem:[#allocation114_spill] sm:$0xff] %v4034_v57  ;;  %4969 = vst [vmem:[#allocation115_spill] sm:$0xff] %v4038_v14  ;;  %v1795_v17 = vmul.f32 %v3227_v34, %v4026_v42  ;;  %v1180_v18 = vmul.f32 %v3268_v3, %v956_v12  ;;  %v4056_v37 = vadd.f32 %v971_v49, %v3340_v6 }
 0x14f   : > { %4970 = vst [vmem:[#allocation116_spill] sm:$0xff] %v4045_v46  ;;  %v4053_v14 = vadd.f32 %v970_v0, %v3312_v43  ;;  %v1181_v15 = vmul.f32 %v3268_v3, %v948_v36  ;;  %v4064_v48 = vsel %vm848_vm1, %v3223_v32, %v4845_v7  ;;  %v4069_v46 = vld [vmem:[%s4792_s3 + $0x8] ss:$0 sm:$0xff]  ;;  %v1194_v43 = vadd.f32 %v3367_v56, %v3354_v28 }
 0x150   : > { %v1196_v0 = vadd.f32 %v1180_v18, %v1120_v19  ;;  %v1279_v6 = vmul.f32 %v3270_v4, %v3293_v20  ;;  %v1779_v49 = vmul.f32 %v4064_v48, %v3225_v33  ;;  %v4079_v16 = vmul.f32 %v3251_v51, %v4026_v42  ;;  %v4973_v18 = vld [vmem:[#allocation8_spill] sm:$0xff] }
 0x151   : > { %v1197_v7 = vadd.f32 %v1181_v15, %v3393_v2  ;;  %v1280_v32 = vmul.f32 %v3270_v4, %v3322_v50  ;;  %v4086_v57 = vmul.f32 %v4064_v48, %v3254_v55  ;;  %v1315_v20 = vmul.f32 %v3260_v62, %v3265_v1 }
 0x152   : > { %4971 = vst [vmem:[#allocation117_spill] sm:$0xff] %v4079_v16  ;;  %v1295_v28 = vadd.f32 %v1279_v6, %v1194_v43  ;;  %v1297_v56 = vadd.f32 %v3431_v31, %v1196_v0  ;;  %v1316_v2 = vmul.f32 %v3260_v62, %v3296_v22  ;;  %v1391_v15 = vmul.f32 %v4069_v46, %v956_v12  ;;  %v4975_v6 = vld [vmem:[#allocation25_spill] sm:$0xff] }
 0x153   : > { %4972 = vst [vmem:[#allocation118_spill] sm:$0xff] %v4086_v57  ;;  %v1296_v19 = vadd.f32 %v1280_v32, %v4973_v18  ;;  %v1298_v58 = vadd.f32 %v3524_v11, %v1197_v7  ;;  %v1392_v16 = vmul.f32 %v4069_v46, %v948_v36  ;;  %v4974_v57 = vld [vmem:[#allocation22_spill] sm:$0xff]  ;;  %v718_v31 = vadd.f32 %v3240_v40, %v4975_v6  ;;  %v4977_v18 = vld [vmem:[#allocation15_spill] sm:$0xff] }
 0x154   : > { %v1331_v50 = vadd.f32 %v1315_v20, %v1295_v28  ;;  %v726_v43 = vadd.f32 %v4974_v57, %v3240_v40  ;;  %v4104_v32 = vld [vmem:[%s4793_s4] ss:$0 sm:$0xff]  ;;  %v1393_v12 = vmul.f32 %v4069_v46, %v3501_v45  ;;  %v1394_v57 = vmul.f32 %v4069_v46, %v3497_v21 }
 0x155   : > { %v1332_v1 = vadd.f32 %v1316_v2, %v1296_v19  ;;  %v4976_v11 = vld [vmem:[#allocation14_spill] sm:$0xff]  ;;  %v1334_v22 = vadd.f32 %v3484_v44, %v1298_v58  ;;  %v742_v28 = vmax.f32 %v718_v31, 0.0  ;;  %v4978_v6 = vrot.slane %v4977_v18, 1  ;;  %v4980_v44 = vld [vmem:[#allocation7_spill] sm:$0xff] }
 0x156   : > { %v1333_v7 = vadd.f32 %v4976_v11, %v1297_v56  ;;  %v1407_v36 = vadd.f32 %v1391_v15, %v1331_v50  ;;  %v744_v0 = vmax.f32 %v726_v43, 0.0  ;;  %v4981_v58 = vrot.slane %v4980_v44, 1 }
 0x157   : > { %v1408_v40 = vadd.f32 %v1392_v16, %v1332_v1  ;;  %v950_v19 = vsel %vm945_vm2, %v4978_v6, %v3233_v38  ;;  %v4979_v56 = vmov %v4978_v6  ;;  %v4126_v43 = vmin.f32 %v742_v28, 6.0 }
 0x158   : > { %v1409_v20 = vadd.f32 %v1393_v12, %v1333_v7  ;;  %v958_v2 = vsel %vm945_vm2, %v4981_v58, %v4979_v56  ;;  %v1429_v15 = vadd.f32 %v4104_v32, %v1407_v36  ;;  %v4124_v50 = vmin.f32 %v744_v0, 6.0 }
 0x159   : > { %v1410_v16 = vadd.f32 %v1394_v57, %v1334_v22  ;;  %v4128_v31 = vadd.f32 %v1795_v17, %v1779_v49  ;;  %v1430_v1 = vadd.f32 %v4104_v32, %v1408_v40  ;;  %v974_v7 = vmul.f32 %v3235_v39, %v958_v2  ;;  %v4991_v22 = vld [vmem:[#allocation16_spill] sm:$0xff] }
 0x15a   : > { %4982 = vst [vmem:[#allocation8_spill] sm:$0xff] %v4124_v50  ;;  %v1431_v11 = vadd.f32 %v4104_v32, %v1409_v20  ;;  %v1445_v12 = vmax.f32 %v1429_v15, 0.0  ;;  %v1924_v6 = vrot.slane %v4124_v50, 7  ;;  %v4136_v56 = vmul.f32 %v3251_v51, %v4124_v50 }
 0x15b   : > { %v975_v36 = vmul.f32 %v3235_v39, %v950_v19  ;;  %v1446_v0 = vmax.f32 %v1430_v1, 0.0  ;;  %v1740_v17 = vrot.slane %v4126_v43, 7  ;;  %v1796_v49 = vmul.f32 %v3227_v34, %v4126_v43 }
 0x15c   : > { %4983 = vst [vmem:[#allocation22_spill] sm:$0xff] %v4136_v56  ;;  %v1461_v28 = vmin.f32 %v1445_v12, 6.0  ;;  %v4984_v57 = vrot.slane %v3998_v5, 7  ;;  %v4152_v58 = vmul.f32 %v3251_v51, %v4126_v43  ;;  %v4988_v34 = vrot.slane %v4026_v42, 7 }
 0x15d   : > { %v1462_v15 = vmin.f32 %v1446_v0, 6.0  ;;  %v1447_v0 = vmax.f32 %v1431_v11, 0.0  ;;  %v990_v20 = vadd.f32 %v974_v7, %v4991_v22  ;;  %v4995_v7 = vld [vmem:[#allocation13_spill] sm:$0xff] }
 0x15e   : > { %v4147_v40 = vsel %vm848_vm1, %v4984_v57, %v1924_v6  ;;  %4986 = vst [vmem:[#allocation14_spill] sm:$0xff] %v4152_v58  ;;  %v4162_v12 = vsel %vm848_vm1, %v4988_v34, %v1740_v17  ;;  %v1432_v6 = vadd.f32 %v4104_v32, %v1410_v16  ;;  %v4993_v17 = vld [vmem:[#allocation17_spill] sm:$0xff] }
 0x15f   : > { %4985 = vst [vmem:[#allocation25_spill] sm:$0xff] %v4147_v40  ;;  %v4156_v1 = vmul.f32 %v4147_v40, %v3254_v55  ;;  %4989 = vst [vmem:[#allocation7_spill] sm:$0xff] %v4162_v12  ;;  %v1780_v57 = vmul.f32 %v4162_v12, %v3225_v33  ;;  %v4169_v51 = vmul.f32 %v4162_v12, %v3254_v55  ;;  %v4992_v40 = vld [vmem:[#allocation27_spill] sm:$0xff]  ;;  %v1463_v16 = vmin.f32 %v1447_v0, 6.0 }
 0x160   : > { %v1477_v56 = vpack.c.bf16 %v1462_v15, %v1461_v28  ;;  %v4173_v5 = vadd.f32 %v975_v36, %v4992_v40  ;;  %v1086_v34 = vadd.f32 %v4993_v17, %v4053_v14  ;;  %v4994_v33 = vld [vmem:[#allocation31_spill] sm:$0xff]  ;;  %v1182_v55 = vmul.f32 %v3268_v3, %v3501_v45  ;;  %v4996_v40 = vld [vmem:[#allocation26_spill] sm:$0xff]  ;;  %v4997_v15 = vld [vmem:[#allocation9_spill] sm:$0xff] }
 0x161   : > { %4987 = vst [vmem:[#allocation15_spill] sm:$0xff] %v4156_v1  ;;  %4990 = vst [vmem:[#allocation119_spill] sm:$0xff] %v4169_v51  ;;  %v1448_v1 = vmax.f32 %v1432_v6, 0.0  ;;  %v4177_v58 = vadd.f32 %v1796_v49, %v1780_v57  ;;  %v1087_v50 = vadd.f32 %v4994_v33, %v4056_v37  ;;  %v1183_v36 = vmul.f32 %v3268_v3, %v3497_v21  ;;  %v4998_v37 = vld [vmem:[#allocation21_spill] sm:$0xff] }
 0x162   : > { %2875 = vmatprep.mubr.bf16.mxu0 %v1477_v56  ;;  %v1122_v22 = vadd.f32 %v4995_v7, %v1086_v34  ;;  %v1184_v28 = vmul.f32 %v3268_v3, %v958_v2  ;;  %v1185_v49 = vmul.f32 %v3268_v3, %v950_v19  ;;  %v1283_v6 = vmul.f32 %v3270_v4, %v4997_v15  ;;  %v5003_v7 = vld [vmem:[#allocation30_spill] sm:$0xff] }
 0x163   : > { %v1464_v11 = vmin.f32 %v1448_v1, 6.0  ;;  %v1123_v14 = vadd.f32 %v4996_v40, %v1087_v50  ;;  %v1284_v57 = vmul.f32 %v3270_v4, %v4998_v37  ;;  %v1319_v1 = vmul.f32 %v3260_v62, %v4980_v44  ;;  %v5004_v40 = vld [vmem:[#allocation33_spill] sm:$0xff] }
 0x164   : > { %v1198_v56 = vadd.f32 %v1182_v55, %v1122_v22  ;;  %v1320_v21 = vmul.f32 %v3260_v62, %v4977_v18  ;;  %v1395_v17 = vmul.f32 %v4069_v46, %v958_v2  ;;  %v1396_v50 = vmul.f32 %v4069_v46, %v950_v19  ;;  %v5002_v2 = vld [vmem:[#allocation20_spill] sm:$0xff] }
 0x165   : > { %v1478_v45 = vpack.c.bf16 %v1464_v11, %v1463_v16  ;;  %v1199_v0 = vadd.f32 %v1183_v36, %v1123_v14  ;;  %v4999_v34 = vrot.slane %v3690_v25, 1  ;;  %v5001_v44 = vrot.slane %v3619_v41, 1  ;;  %v5005_v14 = vld [vmem:[#allocation23_spill] sm:$0xff] }
 0x166   : > { %v1299_v16 = vadd.f32 %v1283_v6, %v1198_v56  ;;  %v988_v19 = vadd.f32 %v5003_v7, %v5002_v2  ;;  %v1089_v15 = vadd.f32 %v5005_v14, %v5004_v40  ;;  %v5006_v56 = vld [vmem:[#allocation12_spill] sm:$0xff]  ;;  %v5007_v2 = vld [vmem:[#allocation18_spill] sm:$0xff]  ;;  %v5008_v40 = vld [vmem:[#allocation11_spill] sm:$0xff] }
 0x167   : > { %v951_v33 = vsel %vm945_vm2, %v4999_v34, %v3233_v38  ;;  %2876 = vmatmul.mubr.bf16.vlgmr.msra.gmra.mrb[16].mxu0 %v1478_v45  ;;  %v5000_v55 = vmov %v4999_v34  ;;  %v1300_v22 = vadd.f32 %v1284_v57, %v1199_v0  ;;  %v1285_v0 = vmul.f32 %v3270_v4, %v3648_v63  ;;  %v5128_v27 = vld [vmem:[#allocation25_spill] sm:$0xff] }
 0x168   : > { %v959_v18 = vsel %vm945_vm2, %v5001_v44, %v5000_v55  ;;  %v977_v11 = vmul.f32 %v3235_v39, %v951_v33  ;;  %v1335_v37 = vadd.f32 %v1319_v1, %v1299_v16  ;;  %v1088_v34 = vadd.f32 %v5006_v56, %v988_v19  ;;  %v5013_v56 = vld [vmem:[#allocation55_spill] sm:$0xff] }
 0x169   : > { %v976_v36 = vmul.f32 %v3235_v39, %v959_v18  ;;  %v1186_v6 = vmul.f32 %v3268_v3, %v959_v18  ;;  %v1187_v55 = vmul.f32 %v3268_v3, %v951_v33  ;;  %v1336_v44 = vadd.f32 %v1320_v21, %v1300_v22 }
 0x16a   : > { %v4218_v45 = vadd.f32 %v977_v11, %v3747_v61  ;;  %v1125_v57 = vadd.f32 %v5007_v2, %v1089_v15  ;;  %v1411_v7 = vadd.f32 %v1395_v17, %v1335_v37  ;;  %v1124_v14 = vadd.f32 %v5008_v40, %v1088_v34  ;;  %v5015_v40 = vld [vmem:[#allocation66_spill] sm:$0xff] }
 0x16b   : > { %v992_v51 = vadd.f32 %v976_v36, %v3678_v8  ;;  %v1286_v1 = vmul.f32 %v3270_v4, %v3723_v53  ;;  %v1321_v61 = vmul.f32 %v3260_v62, %v3619_v41  ;;  %v1412_v16 = vadd.f32 %v1396_v50, %v1336_v44  ;;  %v5011_v36 = vld [vmem:[#allocation39_spill] sm:$0xff] }
 0x16c   : > { %v1201_v11 = vadd.f32 %v1185_v49, %v1125_v57  ;;  %v1322_v21 = vmul.f32 %v3260_v62, %v3690_v25  ;;  %v1397_v8 = vmul.f32 %v4069_v46, %v959_v18  ;;  %v1433_v19 = vadd.f32 %v4104_v32, %v1411_v7  ;;  %v5014_v57 = vld [vmem:[#allocation60_spill] sm:$0xff] }
 0x16d   : > { %v1200_v22 = vadd.f32 %v1184_v28, %v1124_v14  ;;  %v1398_v63 = vmul.f32 %v4069_v46, %v951_v33  ;;  %v5009_v17 = vrot.slane %v3641_v30, 1  ;;  %v1434_v41 = vadd.f32 %v4104_v32, %v1412_v16 }
 0x16e   : > { %v1302_v50 = vadd.f32 %v1286_v1, %v1201_v11  ;;  %v5012_v25 = vrot.slane %v5011_v36, 1  ;;  %v1449_v15 = vmax.f32 %v1433_v19, 0.0  ;;  %v1090_v34 = vadd.f32 %v5013_v56, %v990_v20  ;;  %v5016_v11 = vld [vmem:[#allocation53_spill] sm:$0xff] }
 0x16f   : > { %v952_v53 = vsel %vm945_vm2, %v5009_v17, %v3233_v38  ;;  %v5010_v49 = vmov %v5009_v17  ;;  %v1301_v33 = vadd.f32 %v1285_v0, %v1200_v22  ;;  %v1450_v44 = vmax.f32 %v1434_v41, 0.0  ;;  %v5018_v22 = vld [vmem:[#allocation64_spill] sm:$0xff] }
 0x170   : > { %v960_v18 = vsel %vm945_vm2, %v5012_v25, %v5010_v49  ;;  %v979_v28 = vmul.f32 %v3235_v39, %v952_v53  ;;  %v1338_v2 = vadd.f32 %v1322_v21, %v1302_v50  ;;  %v1091_v14 = vadd.f32 %v5015_v40, %v4173_v5  ;;  %v5017_v49 = vld [vmem:[#allocation52_spill] sm:$0xff] }
 0x171   : > { %v978_v37 = vmul.f32 %v3235_v39, %v960_v18  ;;  %v1465_v1 = vmin.f32 %v1449_v15, 6.0  ;;  %v1337_v16 = vadd.f32 %v1321_v61, %v1301_v33  ;;  %v1126_v25 = vadd.f32 %v5017_v49, %v1090_v34  ;;  %v5020_v33 = vld [vmem:[#allocation57_spill] sm:$0xff] }
 0x172   : > { %v4252_v7 = vadd.f32 %v979_v28, %v5014_v57  ;;  %v1466_v19 = vmin.f32 %v1450_v44, 6.0  ;;  %v1414_v0 = vadd.f32 %v1398_v63, %v1338_v2  ;;  %v1127_v12 = vadd.f32 %v5018_v22, %v1091_v14  ;;  %v5019_v28 = vld [vmem:[#allocation48_spill] sm:$0xff] }
 0x173   : > { %v994_v17 = vadd.f32 %v978_v37, %v5016_v11  ;;  %v1188_v20 = vmul.f32 %v3268_v3, %v960_v18  ;;  %v1413_v41 = vadd.f32 %v1397_v8, %v1337_v16  ;;  %v1189_v21 = vmul.f32 %v3268_v3, %v952_v53 }
 0x174   : > { %v1202_v50 = vadd.f32 %v1186_v6, %v1126_v25  ;;  %v1287_v56 = vmul.f32 %v3270_v4, %v5019_v28  ;;  %v1479_v5 = vpack.c.bf16 %v1466_v19, %v1465_v1  ;;  %v1436_v61 = vadd.f32 %v4104_v32, %v1414_v0  ;;  %v5024_v0 = vld [vmem:[#allocation51_spill] sm:$0xff] }
 0x175   : > { %v1203_v15 = vadd.f32 %v1187_v55, %v1127_v12  ;;  %v1288_v37 = vmul.f32 %v3270_v4, %v5020_v33  ;;  %v1435_v63 = vadd.f32 %v4104_v32, %v1413_v41  ;;  %v1323_v44 = vmul.f32 %v3260_v62, %v5011_v36  ;;  %v5025_v41 = vld [vmem:[#allocation59_spill] sm:$0xff] }
 0x176   : > { %v1303_v34 = vadd.f32 %v1287_v56, %v1202_v50  ;;  %v1324_v8 = vmul.f32 %v3260_v62, %v3641_v30  ;;  %2879 = vmatprep.mubr.bf16.mxu0 %v1479_v5  ;;  %v1452_v6 = vmax.f32 %v1436_v61, 0.0  ;;  %v1399_v57 = vmul.f32 %v4069_v46, %v960_v18 }
 0x177   : > { %v1304_v2 = vadd.f32 %v1288_v37, %v1203_v15  ;;  %v1400_v40 = vmul.f32 %v4069_v46, %v952_v53  ;;  %v1451_v12 = vmax.f32 %v1435_v63, 0.0  ;;  %v5021_v14 = vrot.slane %v3877_v59, 1  ;;  %v5026_v37 = vld [vmem:[#allocation50_spill] sm:$0xff] }
 0x178   : > { %v1339_v55 = vadd.f32 %v1323_v44, %v1303_v34  ;;  %v5023_v16 = vrot.slane %v3795_v35, 1  ;;  %v1468_v11 = vmin.f32 %v1452_v6, 6.0  ;;  %v1092_v22 = vadd.f32 %v5024_v0, %v992_v51  ;;  %v5027_v34 = vld [vmem:[#allocation58_spill] sm:$0xff] }
 0x179   : > { %v953_v1 = vsel %vm945_vm2, %v5021_v14, %v3233_v38  ;;  %v5022_v36 = vmov %v5021_v14  ;;  %v1340_v49 = vadd.f32 %v1324_v8, %v1304_v2  ;;  %v1467_v25 = vmin.f32 %v1451_v12, 6.0 }
 0x17a   : > { %v961_v30 = vsel %vm945_vm2, %v5023_v16, %v5022_v36  ;;  %v981_v53 = vmul.f32 %v3235_v39, %v953_v1  ;;  %v1415_v19 = vadd.f32 %v1399_v57, %v1339_v55  ;;  %v1093_v50 = vadd.f32 %v5025_v41, %v4218_v45 }
 0x17b   : > { %v980_v18 = vmul.f32 %v3235_v39, %v961_v30  ;;  %v1416_v28 = vadd.f32 %v1400_v40, %v1340_v49  ;;  %v1190_v61 = vmul.f32 %v3268_v3, %v961_v30  ;;  %v1480_v15 = vpack.c.bf16 %v1468_v11, %v1467_v25 }
 0x17c   : > { %v4293_v5 = vadd.f32 %v981_v53, %v3941_v29  ;;  %v1437_v33 = vadd.f32 %v4104_v32, %v1415_v19  ;;  %v1128_v63 = vadd.f32 %v5026_v37, %v1092_v22  ;;  %v1129_v44 = vadd.f32 %v5027_v34, %v1093_v50  ;;  %v5032_v19 = vld [vmem:[#allocation85_spill] sm:$0xff] }
 0x17d   : > { %v4290_v56 = vadd.f32 %v980_v18, %v3871_v23  ;;  %v1438_v51 = vadd.f32 %v4104_v32, %v1416_v28  ;;  %v1191_v45 = vmul.f32 %v3268_v3, %v953_v1  ;;  %v1289_v23 = vmul.f32 %v3270_v4, %v3847_v47  ;;  %2880 = vmatmul.mubr.bf16.gmra.mrb[20].mxu0 %v1480_v15  ;;  %v5033_v28 = vld [vmem:[#allocation91_spill] sm:$0xff] }
 0x17e   : > { %v1290_v29 = vmul.f32 %v3270_v4, %v3918_v26  ;;  %v1453_v8 = vmax.f32 %v1437_v33, 0.0  ;;  %v1204_v6 = vadd.f32 %v1188_v20, %v1128_v63  ;;  %v1205_v2 = vadd.f32 %v1189_v21, %v1129_v44 }
 0x17f   : > { %v1325_v57 = vmul.f32 %v3260_v62, %v3795_v35  ;;  %v1454_v40 = vmax.f32 %v1438_v51, 0.0  ;;  %v1326_v12 = vmul.f32 %v3260_v62, %v3877_v59  ;;  %v1401_v55 = vmul.f32 %v4069_v46, %v961_v30 }
 0x180   : > { %v1402_v14 = vmul.f32 %v4069_v46, %v953_v1  ;;  %v1469_v36 = vmin.f32 %v1453_v8, 6.0  ;;  %v1305_v47 = vadd.f32 %v1289_v23, %v1204_v6  ;;  %v1306_v16 = vadd.f32 %v1290_v29, %v1205_v2  ;;  %v5034_v8 = vld [vmem:[#allocation34_spill] sm:$0xff] }
 0x181   : > { %v1094_v26 = vadd.f32 %v3863_v13, %v994_v17  ;;  %v1470_v11 = vmin.f32 %v1454_v40, 6.0  ;;  %v1095_v20 = vadd.f32 %v3936_v60, %v4252_v7  ;;  %v5028_v35 = vrot.slane %v3849_v52, 1  ;;  %v5031_v7 = vld [vmem:[#allocation96_spill] sm:$0xff] }
 0x182   : > { %v5030_v30 = vrot.slane %v3786_v24, 1  ;;  %v1341_v49 = vadd.f32 %v1325_v57, %v1305_v47  ;;  %v1342_v18 = vadd.f32 %v1326_v12, %v1306_v16  ;;  %v1291_v0 = vmul.f32 %v3270_v4, %v5032_v19  ;;  %v5037_v12 = vld [vmem:[#allocation10_spill] sm:$0xff]  ;;  %v5039_v47 = vld [vmem:[#allocation88_spill] sm:$0xff] }
 0x183   : > { %v1165_v21 = vsel %vm945_vm2, %v5028_v35, %v3233_v38  ;;  %v5029_v59 = vmov %v5028_v35  ;;  %v1130_v13 = vadd.f32 %v3857_v10, %v1094_v26  ;;  %v1481_v60 = vpack.c.bf16 %v1470_v11, %v1469_v36  ;;  %v5040_v26 = vld [vmem:[#allocation94_spill] sm:$0xff] }
 0x184   : > { %v1173_v1 = vsel %vm945_vm2, %v5030_v30, %v5029_v59  ;;  %v1131_v53 = vadd.f32 %v5031_v7, %v1095_v20  ;;  %v4331_v25 = vmul.f32 %v3268_v3, %v1165_v21  ;;  %v1417_v22 = vadd.f32 %v1401_v55, %v1341_v49  ;;  %v5041_v49 = vld [vmem:[#allocation28_spill] sm:$0xff]  ;;  %v5043_v7 = vld [vmem:[#allocation47_spill] sm:$0xff] }
 0x185   : > { %v4327_v17 = vmul.f32 %v3268_v3, %v1173_v1  ;;  %v1418_v41 = vadd.f32 %v1402_v14, %v1342_v18  ;;  %v1206_v50 = vadd.f32 %v1190_v61, %v1130_v13  ;;  %v1292_v15 = vmul.f32 %v3270_v4, %v5033_v28  ;;  %2883 = vmatprep.mubr.bf16.mxu0 %v1481_v60  ;;  %v5042_v13 = vld [vmem:[#allocation37_spill] sm:$0xff]  ;;  %v5046_v28 = vld [vmem:[#allocation24_spill] sm:$0xff] }
 0x186   : > { %v1207_v10 = vadd.f32 %v1191_v45, %v1131_v53  ;;  %v1327_v33 = vmul.f32 %v3260_v62, %v3786_v24  ;;  %v1328_v37 = vmul.f32 %v3260_v62, %v3849_v52  ;;  %v1403_v63 = vmul.f32 %v4069_v46, %v1173_v1 }
 0x187   : > { %v1439_v34 = vadd.f32 %v4104_v32, %v1417_v22  ;;  %v1440_v44 = vadd.f32 %v4104_v32, %v1418_v41  ;;  %v1307_v51 = vadd.f32 %v1291_v0, %v1206_v50  ;;  %v1404_v61 = vmul.f32 %v4069_v46, %v1165_v21  ;;  %v5044_v22 = vld [vmem:[#allocation43_spill] sm:$0xff]  ;;  %v5045_v50 = vld [vmem:[#allocation49_spill] sm:$0xff] }
 0x188   : > { %v1308_v23 = vadd.f32 %v1292_v15, %v1207_v10  ;;  %v1853_v29 = vmul.f32 %v1173_v1, %v3235_v39  ;;  %v1854_v45 = vmul.f32 %v1165_v21, %v3235_v39  ;;  %v5035_v24 = vrot.slane %v5034_v8, 1 }
 0x189   : > { %v1455_v6 = vmax.f32 %v1439_v34, 0.0  ;;  %v1456_v2 = vmax.f32 %v1440_v44, 0.0  ;;  %v1343_v57 = vadd.f32 %v1327_v33, %v1307_v51  ;;  %v5038_v55 = vrot.slane %v5037_v12, 1  ;;  %v5047_v33 = vld [vmem:[#allocation36_spill] sm:$0xff]  ;;  %v5049_v44 = vld [vmem:[#allocation54_spill] sm:$0xff]  ;;  %v5050_v51 = vld [vmem:[#allocation41_spill] sm:$0xff] }
 0x18a   : > { %v1839_v52 = vsel %vm945_vm2, %v5035_v24, %v3233_v38  ;;  %v5036_v40 = vmov %v5035_v24  ;;  %v1344_v36 = vadd.f32 %v1328_v37, %v1308_v23  ;;  %v1869_v16 = vadd.f32 %v1853_v29, %v5039_v47  ;;  %v5051_v29 = vld [vmem:[#allocation29_spill] sm:$0xff]  ;;  %v5052_v24 = vld [vmem:[#allocation46_spill] sm:$0xff]  ;;  %v5054_v47 = vld [vmem:[#allocation19_spill] sm:$0xff] }
 0x18b   : > { %v1847_v14 = vsel %vm945_vm2, %v5038_v55, %v5036_v40  ;;  %v1870_v11 = vadd.f32 %v1854_v45, %v5040_v26  ;;  %v1471_v35 = vmin.f32 %v1455_v6, 6.0  ;;  %v1472_v21 = vmin.f32 %v1456_v2, 6.0  ;;  %v5053_v2 = vld [vmem:[#allocation45_spill] sm:$0xff] }
 0x18c   : > { %v1857_v20 = vmul.f32 %v1847_v14, %v3235_v39  ;;  %v1419_v59 = vadd.f32 %v1403_v63, %v1343_v57  ;;  %v1858_v30 = vmul.f32 %v1839_v52, %v3235_v39  ;;  %v1420_v1 = vadd.f32 %v1404_v61, %v1344_v36  ;;  %v5048_v63 = vld [vmem:[#allocation42_spill] sm:$0xff] }
 0x18d   : > { %v1965_v60 = vadd.f32 %v5042_v13, %v1869_v16  ;;  %v1966_v53 = vadd.f32 %v5043_v7, %v1870_v11  ;;  %v1482_v19 = vpack.c.bf16 %v1472_v21, %v1471_v35  ;;  %v1967_v15 = vadd.f32 %v5046_v28, %v5045_v50  ;;  %v5055_v35 = vld [vmem:[#allocation40_spill] sm:$0xff]  ;;  %v5057_v50 = vld [vmem:[#allocation83_spill] sm:$0xff] }
 0x18e   : > { %v4363_v18 = vadd.f32 %v1857_v20, %v5041_v49  ;;  %v1441_v0 = vadd.f32 %v4104_v32, %v1419_v59  ;;  %v4369_v41 = vadd.f32 %v1858_v30, %v5044_v22  ;;  %v1442_v10 = vadd.f32 %v4104_v32, %v1420_v1 }
 0x18f   : > { %v1997_v37 = vadd.f32 %v5047_v33, %v1965_v60  ;;  %v1998_v34 = vadd.f32 %v5048_v63, %v1966_v53  ;;  %v2000_v61 = vadd.f32 %v5050_v51, %v5049_v44  ;;  %2884 = vmatmul.mubr.bf16.gmra.mrb[24].mxu0 %v1482_v19  ;;  %v1999_v45 = vadd.f32 %v5051_v29, %v1967_v15  ;;  %v5060_v44 = vld [vmem:[#allocation35_spill] sm:$0xff]  ;;  %v5063_v29 = vld [vmem:[#allocation38_spill] sm:$0xff] }
 0x190   : > { %v1457_v23 = vmax.f32 %v1441_v0, 0.0  ;;  %v2053_v6 = vmul.f32 %v5052_v24, %v3268_v3  ;;  %v2054_v57 = vmul.f32 %v5053_v2, %v3268_v3  ;;  %v1458_v40 = vmax.f32 %v1442_v10, 0.0  ;;  %v5056_v0 = vld [vmem:[#allocation72_spill] sm:$0xff] }
 0x191   : > { %v2055_v55 = vmul.f32 %v1847_v14, %v3268_v3  ;;  %v2056_v36 = vmul.f32 %v1839_v52, %v3268_v3  ;;  %v2150_v16 = vmul.f32 %v5054_v47, %v3270_v4  ;;  %v2151_v21 = vmul.f32 %v5055_v35, %v3270_v4  ;;  %v5066_v47 = vld [vmem:[#allocation69_spill] sm:$0xff] }
 0x192   : > { %v1473_v26 = vmin.f32 %v1457_v23, 6.0  ;;  %v2069_v11 = vadd.f32 %v2053_v6, %v1997_v37  ;;  %v2070_v20 = vadd.f32 %v2054_v57, %v1998_v34  ;;  %v1474_v59 = vmin.f32 %v1458_v40, 6.0  ;;  %v5058_v37 = vld [vmem:[#allocation87_spill] sm:$0xff]  ;;  %v5064_v57 = vld [vmem:[#allocation84_spill] sm:$0xff]  ;;  %v5065_v40 = vld [vmem:[#allocation89_spill] sm:$0xff] }
 0x193   : > { %v2071_v30 = vadd.f32 %v2055_v55, %v1999_v45  ;;  %v2072_v1 = vadd.f32 %v2056_v36, %v2000_v61  ;;  %v2182_v49 = vmul.f32 %v3260_v62, %v5037_v12  ;;  %v2183_v7 = vmul.f32 %v3260_v62, %v5034_v8  ;;  %v5059_v12 = vld [vmem:[#allocation92_spill] sm:$0xff] }
 0x194   : > { %v2166_v13 = vadd.f32 %v2150_v16, %v2069_v11  ;;  %v2167_v60 = vadd.f32 %v2151_v21, %v2070_v20  ;;  %v2254_v53 = vmul.f32 %v4069_v46, %v1847_v14  ;;  %v1483_v19 = vpack.c.bf16 %v1474_v59, %v1473_v26  ;;  %v5061_v14 = vld [vmem:[#allocation44_spill] sm:$0xff]  ;;  %v5067_v26 = vld [vmem:[#allocation78_spill] sm:$0xff] }
 0x195   : > { %v2168_v22 = vadd.f32 %v5056_v0, %v2071_v30  ;;  %v2169_v28 = vadd.f32 %v5057_v50, %v2072_v1  ;;  %v2255_v15 = vmul.f32 %v4069_v46, %v1839_v52  ;;  %v1096_v63 = vadd.f32 %v5058_v37, %v4290_v56  ;;  %v5062_v61 = vld [vmem:[#allocation32_spill] sm:$0xff] }
 0x196   : > { %v2198_v10 = vadd.f32 %v2182_v49, %v2166_v13  ;;  %v2199_v33 = vadd.f32 %v2183_v7, %v2167_v60  ;;  %v1097_v34 = vadd.f32 %v5059_v12, %v4293_v5  ;;  %2887 = vmatprep.mubr.bf16.mxu0 %v1483_v19  ;;  %v1293_v8 = vmul.f32 %v3270_v4, %v5060_v44  ;;  %v5068_v30 = vld [vmem:[#allocation80_spill] sm:$0xff]  ;;  %v5069_v49 = vld [vmem:[#allocation79_spill] sm:$0xff] }
 0x197   : > { %v1294_v51 = vmul.f32 %v3270_v4, %v5061_v14  ;;  %v1329_v23 = vmul.f32 %v3260_v62, %v5062_v61  ;;  %v1330_v52 = vmul.f32 %v3260_v62, %v5063_v29  ;;  %v1132_v56 = vadd.f32 %v5064_v57, %v1096_v63  ;;  %v5075_v61 = vld [vmem:[#allocation65_spill] sm:$0xff] }
 0x198   : > { %v2270_v45 = vadd.f32 %v2254_v53, %v2198_v10  ;;  %v2271_v6 = vadd.f32 %v2255_v15, %v2199_v33  ;;  %v1133_v55 = vadd.f32 %v5065_v40, %v1097_v34  ;;  %v1405_v5 = vmul.f32 %v4069_v46, %v5052_v24  ;;  %v5073_v53 = vld [vmem:[#allocation56_spill] sm:$0xff] }
 0x199   : > { %v1406_v36 = vmul.f32 %v4069_v46, %v5053_v2  ;;  %v2200_v16 = vadd.f32 %v5066_v47, %v2168_v22  ;;  %v2201_v11 = vadd.f32 %v5067_v26, %v2169_v28  ;;  %v1208_v21 = vadd.f32 %v4327_v17, %v1132_v56  ;;  %v5070_v2 = vld [vmem:[#allocation70_spill] sm:$0xff]  ;;  %v5077_v56 = vld [vmem:[#allocation68_spill] sm:$0xff] }
 0x19a   : > { %v2286_v20 = vadd.f32 %v4104_v32, %v2270_v45  ;;  %v2287_v35 = vadd.f32 %v4104_v32, %v2271_v6  ;;  %v1209_v59 = vadd.f32 %v4331_v25, %v1133_v55  ;;  %v2256_v1 = vmul.f32 %v4069_v46, %v5068_v30  ;;  %v5076_v45 = vld [vmem:[#allocation77_spill] sm:$0xff] }
 0x19b   : > { %v2257_v24 = vmul.f32 %v4069_v46, %v5069_v49  ;;  %v5071_v13 = vrot.slane %v5070_v2, 1  ;;  %v5074_v19 = vrot.slane %v5073_v53, 1  ;;  %v1309_v22 = vadd.f32 %v1293_v8, %v1208_v21  ;;  %v5080_v21 = vld [vmem:[#allocation76_spill] sm:$0xff] }
 0x19c   : > { %v2302_v25 = vmax.f32 %v2286_v20, 0.0  ;;  %v2303_v0 = vmax.f32 %v2287_v35, 0.0  ;;  %v1310_v50 = vadd.f32 %v1294_v51, %v1209_v59  ;;  %v2272_v28 = vadd.f32 %v2256_v1, %v2200_v16  ;;  %v5079_v20 = vld [vmem:[#allocation67_spill] sm:$0xff] }
 0x19d   : > { %v1841_v60 = vsel %vm945_vm2, %v5071_v13, %v3233_v38  ;;  %v5072_v7 = vmov %v5071_v13  ;;  %v2273_v15 = vadd.f32 %v2257_v24, %v2201_v11  ;;  %v1345_v12 = vadd.f32 %v1329_v23, %v1309_v22  ;;  %v5078_v23 = vld [vmem:[#allocation82_spill] sm:$0xff]  ;;  %v5082_v22 = vld [vmem:[#allocation73_spill] sm:$0xff] }
 0x19e   : > { %v1849_v17 = vsel %vm945_vm2, %v5074_v19, %v5072_v7  ;;  %v1862_v33 = vmul.f32 %v1841_v60, %v3235_v39  ;;  %v2318_v37 = vmin.f32 %v2302_v25, 6.0  ;;  %v2319_v63 = vmin.f32 %v2303_v0, 6.0  ;;  %v5081_v25 = vld [vmem:[#allocation61_spill] sm:$0xff] }
 0x19f   : > { %v1861_v10 = vmul.f32 %v1849_v17, %v3235_v39  ;;  %v1346_v34 = vadd.f32 %v1330_v52, %v1310_v50  ;;  %v2288_v44 = vadd.f32 %v4104_v32, %v2272_v28  ;;  %v2289_v14 = vadd.f32 %v4104_v32, %v2273_v15 }
 0x1a0   : > { %v4444_v8 = vadd.f32 %v1862_v33, %v5076_v45  ;;  %v2334_v51 = vpack.c.bf16 %v2319_v63, %v2318_v37  ;;  %v1421_v6 = vadd.f32 %v1405_v5, %v1345_v12  ;;  %v1969_v40 = vadd.f32 %v5077_v56, %v4363_v18 }
 0x1a1   : > { %v4441_v29 = vadd.f32 %v1861_v10, %v5075_v61  ;;  %v1422_v57 = vadd.f32 %v1406_v36, %v1346_v34  ;;  %v2304_v55 = vmax.f32 %v2288_v44, 0.0  ;;  %v2305_v47 = vmax.f32 %v2289_v14, 0.0  ;;  %v5083_v44 = vld [vmem:[#allocation101_spill] sm:$0xff] }
 0x1a2   : > { %v1970_v52 = vadd.f32 %v5078_v23, %v4369_v41  ;;  %v2057_v16 = vmul.f32 %v5068_v30, %v3268_v3  ;;  %2907 = vmatprep.mubr.bf16.mxu1 %v2334_v51  ;;  %v1443_v26 = vadd.f32 %v4104_v32, %v1421_v6  ;;  %v2001_v35 = vadd.f32 %v5079_v20, %v1969_v40  ;;  %v5088_v6 = vld [vmem:[#allocation71_spill] sm:$0xff] }
 0x1a3   : > { %v1444_v11 = vadd.f32 %v4104_v32, %v1422_v57  ;;  %v2058_v5 = vmul.f32 %v5069_v49, %v3268_v3  ;;  %v2320_v36 = vmin.f32 %v2304_v55, 6.0  ;;  %v2321_v18 = vmin.f32 %v2305_v47, 6.0  ;;  %v5089_v57 = vld [vmem:[#allocation81_spill] sm:$0xff]  ;;  %v5090_v47 = vld [vmem:[#allocation63_spill] sm:$0xff] }
 0x1a4   : > { %v2002_v59 = vadd.f32 %v5080_v21, %v1970_v52  ;;  %v2059_v1 = vmul.f32 %v1849_v17, %v3268_v3  ;;  %v1459_v41 = vmax.f32 %v1443_v26, 0.0  ;;  %v2060_v30 = vmul.f32 %v1841_v60, %v3268_v3  ;;  %v5091_v52 = vld [vmem:[#allocation86_spill] sm:$0xff] }
 0x1a5   : > { %v1460_v24 = vmax.f32 %v1444_v11, 0.0  ;;  %v2073_v13 = vadd.f32 %v2057_v16, %v2001_v35  ;;  %v2335_v7 = vpack.c.bf16 %v2321_v18, %v2320_v36  ;;  %v2154_v0 = vmul.f32 %v5081_v25, %v3270_v4  ;;  %v5092_v16 = vld [vmem:[#allocation75_spill] sm:$0xff]  ;;  %v5093_v36 = vld [vmem:[#allocation106_spill] sm:$0xff] }
 0x1a6   : > { %v2074_v19 = vadd.f32 %v2058_v5, %v2002_v59  ;;  %v2155_v50 = vmul.f32 %v5082_v22, %v3270_v4  ;;  %v1475_v49 = vmin.f32 %v1459_v41, 6.0  ;;  %v2186_v15 = vmul.f32 %v3260_v62, %v5073_v53  ;;  %v5086_v53 = vld [vmem:[#allocation97_spill] sm:$0xff]  ;;  %v5094_v59 = vld [vmem:[#allocation62_spill] sm:$0xff] }
 0x1a7   : > { %v1476_v28 = vmin.f32 %v1460_v24, 6.0  ;;  %v2187_v10 = vmul.f32 %v3260_v62, %v5070_v2  ;;  %2908 = vmatmul.mubr.bf16.vlgmr.msra.gmra.mrb[16].mxu1 %v2335_v7  ;;  %v2170_v33 = vadd.f32 %v2154_v0, %v2073_v13  ;;  %v2258_v63 = vmul.f32 %v4069_v46, %v1849_v17  ;;  %v5095_v24 = vld [vmem:[#allocation74_spill] sm:$0xff] }
 0x1a8   : > { %v2171_v37 = vadd.f32 %v2155_v50, %v2074_v19  ;;  %v2259_v12 = vmul.f32 %v4069_v46, %v1841_v60  ;;  %v5084_v14 = vrot.slane %v5083_v44, 1  ;;  %v5087_v51 = vrot.slane %v5086_v53, 1  ;;  %v5096_v7 = vld [vmem:[#allocation102_spill] sm:$0xff] }
 0x1a9   : > { %v1484_v34 = vpack.c.bf16 %v1476_v28, %v1475_v49  ;;  %v1875_v56 = vadd.f32 %v5089_v57, %v5088_v6  ;;  %v2202_v17 = vadd.f32 %v2186_v15, %v2170_v33  ;;  %v1972_v26 = vadd.f32 %v5092_v16, %v5091_v52  ;;  %v5102_v6 = vld [vmem:[#allocation104_spill] sm:$0xff] }
 0x1aa   : > { %v1842_v61 = vsel %vm945_vm2, %v5084_v14, %v3233_v38  ;;  %v5085_v45 = vmov %v5084_v14  ;;  %v2203_v40 = vadd.f32 %v2187_v10, %v2171_v37  ;;  %v2156_v19 = vmul.f32 %v5096_v7, %v3270_v4  ;;  %v5100_v14 = vld [vmem:[#allocation90_spill] sm:$0xff] }
 0x1ab   : > { %v1850_v2 = vsel %vm945_vm2, %v5087_v51, %v5085_v45  ;;  %v1864_v55 = vmul.f32 %v1842_v61, %v3235_v39  ;;  %2888 = vmatmul.mubr.bf16.gmra.mrb[28].mxu0 %v1484_v34  ;;  %v1971_v23 = vadd.f32 %v5090_v47, %v1875_v56  ;;  %v2062_v20 = vmul.f32 %v1842_v61, %v3268_v3  ;;  %v5103_v56 = vld [vmem:[#allocation112_spill] sm:$0xff] }
 0x1ac   : > { %v1863_v60 = vmul.f32 %v1850_v2, %v3235_v39  ;;  %v2061_v11 = vmul.f32 %v1850_v2, %v3268_v3  ;;  %v2274_v35 = vadd.f32 %v2258_v63, %v2202_v17  ;;  %v2275_v5 = vadd.f32 %v2259_v12, %v2203_v40 }
 0x1ad   : > { %v1880_v21 = vadd.f32 %v1864_v55, %v4023_v54  ;;  %v2003_v41 = vadd.f32 %v5094_v59, %v1971_v23  ;;  %v2004_v13 = vadd.f32 %v5095_v24, %v1972_v26  ;;  %v2157_v25 = vmul.f32 %v3992_v9, %v3270_v4  ;;  %v5097_v9 = vld [vmem:[#allocation100_spill] sm:$0xff]  ;;  %v5104_v55 = vld [vmem:[#allocation99_spill] sm:$0xff] }
 0x1ae   : > { %v1879_v18 = vadd.f32 %v1863_v60, %v5093_v36  ;;  %v2290_v0 = vadd.f32 %v4104_v32, %v2274_v35  ;;  %v2291_v22 = vadd.f32 %v4104_v32, %v2275_v5  ;;  %v2188_v50 = vmul.f32 %v3260_v62, %v5086_v53  ;;  %v5105_v23 = vld [vmem:[#allocation111_spill] sm:$0xff]  ;;  %v5107_v5 = vld [vmem:[#allocation108_spill] sm:$0xff] }
 0x1af   : > { %v2189_v54 = vmul.f32 %v3260_v62, %v5083_v44  ;;  %v2075_v49 = vadd.f32 %v2059_v1, %v2003_v41  ;;  %v2076_v28 = vadd.f32 %v2060_v30, %v2004_v13  ;;  %v2260_v15 = vmul.f32 %v4069_v46, %v1850_v2  ;;  %v5106_v26 = vld [vmem:[#allocation103_spill] sm:$0xff] }
 0x1b0   : > { %v2261_v10 = vmul.f32 %v4069_v46, %v1842_v61  ;;  %v2306_v33 = vmax.f32 %v2290_v0, 0.0  ;;  %v2307_v37 = vmax.f32 %v2291_v22, 0.0  ;;  %v5098_v63 = vrot.slane %v5097_v9, 1  ;;  %v5108_v13 = vld [vmem:[#allocation95_spill] sm:$0xff] }
 0x1b1   : > { %v5101_v45 = vrot.slane %v5100_v14, 1  ;;  %v2172_v30 = vadd.f32 %v2156_v19, %v2075_v49  ;;  %v2173_v44 = vadd.f32 %v2157_v25, %v2076_v28  ;;  %v1973_v57 = vadd.f32 %v5102_v6, %v4441_v29  ;;  %v5109_v25 = vld [vmem:[#allocation107_spill] sm:$0xff]  ;;  %v5114_v6 = vld [vmem:[#allocation110_spill] sm:$0xff] }
 0x1b2   : > { %v1843_v12 = vsel %vm945_vm2, %v5098_v63, %v3233_v38  ;;  %v5099_v34 = vmov %v5098_v63  ;;  %v2322_v51 = vmin.f32 %v2306_v33, 6.0  ;;  %v2323_v2 = vmin.f32 %v2307_v37, 6.0 }
 0x1b3   : > { %v1851_v1 = vsel %vm945_vm2, %v5101_v45, %v5099_v34  ;;  %v1866_v61 = vmul.f32 %v1843_v12, %v3235_v39  ;;  %v1974_v17 = vadd.f32 %v5103_v56, %v4444_v8  ;;  %v2204_v40 = vadd.f32 %v2188_v50, %v2172_v30 }
 0x1b4   : > { %v1865_v53 = vmul.f32 %v1851_v1, %v3235_v39  ;;  %v2205_v60 = vadd.f32 %v2189_v54, %v2173_v44  ;;  %v2336_v16 = vpack.c.bf16 %v2323_v2, %v2322_v51  ;;  %v2005_v35 = vadd.f32 %v5106_v26, %v1973_v57  ;;  %v5113_v44 = vld [vmem:[#allocation98_spill] sm:$0xff] }
 0x1b5   : > { %v1882_v52 = vadd.f32 %v1866_v61, %v5105_v23  ;;  %v2006_v36 = vadd.f32 %v5107_v5, %v1974_v17  ;;  %v2063_v59 = vmul.f32 %v1851_v1, %v3268_v3  ;;  %v2276_v41 = vadd.f32 %v2260_v15, %v2204_v40 }
 0x1b6   : > { %v1881_v47 = vadd.f32 %v1865_v53, %v5104_v55  ;;  %v2277_v24 = vadd.f32 %v2261_v10, %v2205_v60  ;;  %v2064_v29 = vmul.f32 %v1843_v12, %v3268_v3  ;;  %v2158_v8 = vmul.f32 %v5108_v13, %v3270_v4  ;;  %2911 = vmatprep.mubr.bf16.mxu1 %v2336_v16  ;;  %v5115_v60 = vld [vmem:[#allocation93_spill] sm:$0xff] }
 0x1b7   : > { %v2077_v7 = vadd.f32 %v2061_v11, %v2005_v35  ;;  %v2078_v19 = vadd.f32 %v2062_v20, %v2006_v36  ;;  %v2159_v0 = vmul.f32 %v5109_v25, %v3270_v4  ;;  %v2190_v22 = vmul.f32 %v3260_v62, %v5100_v14  ;;  %v5116_v16 = vld [vmem:[#allocation105_spill] sm:$0xff] }
 0x1b8   : > { %v2292_v50 = vadd.f32 %v4104_v32, %v2276_v41  ;;  %v2293_v54 = vadd.f32 %v4104_v32, %v2277_v24  ;;  %v2191_v49 = vmul.f32 %v3260_v62, %v5097_v9  ;;  %v2262_v28 = vmul.f32 %v4069_v46, %v1851_v1 }
 0x1b9   : > { %v2174_v15 = vadd.f32 %v2158_v8, %v2077_v7  ;;  %v2175_v10 = vadd.f32 %v2159_v0, %v2078_v19  ;;  %v2263_v11 = vmul.f32 %v4069_v46, %v1843_v12  ;;  %v5110_v20 = vrot.slane %v4126_v43, 1 }
 0x1ba   : > { %v2308_v37 = vmax.f32 %v2292_v50, 0.0  ;;  %v2309_v63 = vmax.f32 %v2293_v54, 0.0  ;;  %v5112_v14 = vrot.slane %v4026_v42, 1  ;;  %v1975_v53 = vadd.f32 %v5113_v44, %v1879_v18 }
 0x1bb   : > { %v1844_v33 = vsel %vm945_vm2, %v5110_v20, %v3233_v38  ;;  %v5111_v34 = vmov %v5110_v20  ;;  %v2206_v1 = vadd.f32 %v2190_v22, %v2174_v15  ;;  %v2207_v30 = vadd.f32 %v2191_v49, %v2175_v10 }
 0x1bc   : > { %v1852_v9 = vsel %vm945_vm2, %v5112_v14, %v5111_v34  ;;  %v1868_v45 = vmul.f32 %v1844_v33, %v3235_v39  ;;  %v2324_v61 = vmin.f32 %v2308_v37, 6.0  ;;  %v2325_v51 = vmin.f32 %v2309_v63, 6.0  ;;  %v5123_v37 = vld [vmem:[#allocation14_spill] sm:$0xff]  ;;  %v5125_v34 = vld [vmem:[#allocation109_spill] sm:$0xff] }
 0x1bd   : > { %v1867_v12 = vmul.f32 %v1852_v9, %v3235_v39  ;;  %v1976_v57 = vadd.f32 %v5114_v6, %v1880_v21  ;;  %v2278_v56 = vadd.f32 %v2262_v28, %v2206_v1  ;;  %v2279_v17 = vadd.f32 %v2263_v11, %v2207_v30  ;;  %v5122_v11 = vld [vmem:[#allocation117_spill] sm:$0xff] }
 0x1be   : > { %v1884_v2 = vadd.f32 %v1868_v45, %v4177_v58  ;;  %v2007_v55 = vadd.f32 %v5115_v60, %v1975_v53  ;;  %v2337_v23 = vpack.c.bf16 %v2325_v51, %v2324_v61  ;;  %v2065_v35 = vmul.f32 %v1852_v9, %v3268_v3  ;;  %v5127_v53 = vld [vmem:[#allocation114_spill] sm:$0xff] }
 0x1bf   : > { %v1883_v40 = vadd.f32 %v1867_v12, %v4128_v31  ;;  %v2008_v26 = vadd.f32 %v5116_v16, %v1976_v57  ;;  %v2066_v39 = vmul.f32 %v1844_v33, %v3268_v3  ;;  %v2294_v18 = vadd.f32 %v4104_v32, %v2278_v56  ;;  %v5117_v31 = vld [vmem:[#allocation7_spill] sm:$0xff] }
 0x1c0   : > { %v2295_v5 = vadd.f32 %v4104_v32, %v2279_v17  ;;  %v2079_v58 = vadd.f32 %v2063_v59, %v2007_v55  ;;  %v2160_v21 = vmul.f32 %v4064_v48, %v3270_v4  ;;  %2912 = vmatmul.mubr.bf16.gmra.mrb[20].mxu1 %v2337_v23  ;;  %v2161_v41 = vmul.f32 %v5117_v31, %v3270_v4  ;;  %v5118_v48 = vld [vmem:[#allocation118_spill] sm:$0xff]  ;;  %v5129_v55 = vld [vmem:[#allocation116_spill] sm:$0xff]  ;;  %v5130_v16 = vld [vmem:[#allocation15_spill] sm:$0xff] }
 0x1c1   : > { %v2080_v36 = vadd.f32 %v2064_v29, %v2008_v26  ;;  %v2192_v24 = vmul.f32 %v3260_v62, %v4026_v42  ;;  %v2193_v13 = vmul.f32 %v3260_v62, %v4126_v43  ;;  %v2310_v8 = vmax.f32 %v2294_v18, 0.0  ;;  %v5119_v29 = vld [vmem:[#allocation119_spill] sm:$0xff]  ;;  %v5120_v42 = vld [vmem:[#allocation8_spill] sm:$0xff]  ;;  %v5133_v31 = vld [vmem:[#allocation113_spill] sm:$0xff] }
 0x1c2   : > { %v2311_v7 = vmax.f32 %v2295_v5, 0.0  ;;  %v2176_v19 = vadd.f32 %v2160_v21, %v2079_v58  ;;  %v2264_v25 = vmul.f32 %v4069_v46, %v1852_v9  ;;  %v2265_v0 = vmul.f32 %v4069_v46, %v1844_v33  ;;  %v5131_v5 = vld [vmem:[#allocation6_spill] sm:$0xff]  ;;  %v5132_v21 = vld [vmem:[#allocation115_spill] sm:$0xff] }
 0x1c3   : > { %v2177_v59 = vadd.f32 %v2161_v41, %v2080_v36  ;;  %v1977_v22 = vadd.f32 %v5118_v48, %v1881_v47  ;;  %v1978_v50 = vadd.f32 %v5119_v29, %v1882_v52  ;;  %v2326_v54 = vmin.f32 %v2310_v8, 6.0 }
 0x1c4   : > { %v2327_v49 = vmin.f32 %v2311_v7, 6.0  ;;  %v2208_v28 = vadd.f32 %v2192_v24, %v2176_v19  ;;  %v5121_v15 = vrot.slane %v5120_v42, 1  ;;  %v5126_v47 = vrot.slane %v5125_v34, 1  ;;  %v5134_v24 = vld [vmem:[#allocation22_spill] sm:$0xff] }
 0x1c5   : > { %v2209_v10 = vadd.f32 %v2193_v13, %v2177_v59  ;;  %v2009_v20 = vadd.f32 %v5122_v11, %v1977_v22  ;;  %v2010_v63 = vadd.f32 %v5123_v37, %v1978_v50  ;;  %v2195_v14 = vmul.f32 %v3260_v62, %v5120_v42 }
 0x1c6   : > { %v2044_v43 = vsel %vm945_vm2, %v5121_v15, %v3233_v38  ;;  %v5124_v33 = vmov %v5121_v15  ;;  %v2338_v9 = vpack.c.bf16 %v2327_v49, %v2326_v54  ;;  %v2280_v45 = vadd.f32 %v2264_v25, %v2208_v28 }
 0x1c7   : > { %v2052_v52 = vsel %vm945_vm2, %v5126_v47, %v5124_v33  ;;  %v2281_v30 = vadd.f32 %v2265_v0, %v2209_v10  ;;  %v2081_v12 = vadd.f32 %v2065_v35, %v2009_v20  ;;  %v2082_v44 = vadd.f32 %v2066_v39, %v2010_v63 }
 0x1c8   : > { %v2067_v1 = vmul.f32 %v2052_v52, %v3268_v3  ;;  %v2162_v61 = vmul.f32 %v5127_v53, %v3270_v4  ;;  %2915 = vmatprep.mubr.bf16.mxu1 %v2338_v9  ;;  %v2296_v51 = vadd.f32 %v4104_v32, %v2280_v45  ;;  %v2068_v6 = vmul.f32 %v2044_v43, %v3268_v3  ;;  %v4621_v9 = vld [vmem:[%s4795_s6] ss:$0 sm:$0xff] }
 0x1c9   : > { %v2163_v57 = vmul.f32 %v5128_v27, %v3270_v4  ;;  %v2266_v56 = vmul.f32 %v4069_v46, %v2052_v52  ;;  %v2297_v17 = vadd.f32 %v4104_v32, %v2281_v30  ;;  %v1979_v23 = vadd.f32 %v5129_v55, %v1883_v40  ;;  %v2752_v52 = vld [vmem:[%s3158_s21 + $0x8] sm:$0xff]  }
 0x1ca   : > { %v2178_v60 = vadd.f32 %v2162_v61, %v2081_v12  ;;  %v1980_v26 = vadd.f32 %v5130_v16, %v1884_v2  ;;  %v2312_v35 = vmax.f32 %v2296_v51, 0.0  ;;  %v2267_v18 = vmul.f32 %v4069_v46, %v2044_v43  ;;  %v2753_v16 = vld [vmem:[%s3158_s21 + $0x10] sm:$0xff]  }
 0x1cb   : > { %v2179_v39 = vadd.f32 %v2163_v57, %v2082_v44  ;;  %v2164_v58 = vmul.f32 %v3270_v4, %v5131_v5  ;;  %v2313_v3 = vmax.f32 %v2297_v17, 0.0  ;;  %v2011_v41 = vadd.f32 %v5133_v31, %v1979_v23  ;;  %v2754_v23 = vld [vmem:[%s3158_s21 + $0x18] sm:$0xff]  }
 0x1cc   : > { %v2210_v36 = vadd.f32 %v5132_v21, %v2178_v60  ;;  %v2012_v13 = vadd.f32 %v5134_v24, %v1980_v26  ;;  %v2328_v8 = vmin.f32 %v2312_v35, 6.0  ;;  %v2196_v40 = vmul.f32 0.0, %v3260_v62 }
 0x1cd   : > { %v2211_v7 = vadd.f32 %v2195_v14, %v2179_v39  ;;  %v2329_v19 = vmin.f32 %v2313_v3, 6.0  ;;  %v2083_v25 = vadd.f32 %v2067_v1, %v2011_v41  ;;  %v2268_v48 = vmul.f32 %v4069_v46, %v3233_v38  ;;  %v2689_v14 = vld [vmem:[%s3158_s21] sm:$0xff]  }
 0x1ce   : > { %v2282_v2 = vadd.f32 %v2266_v56, %v2210_v36  ;;  %v2084_v59 = vadd.f32 %v2068_v6, %v2012_v13  ;;  %v2694_v45 = vunpack.c.l.bf16 %v2752_v52  ;;  %v2690_v1 = vunpack.c.l.bf16 %v2689_v14 }
 0x1cf   : > { %v2283_v0 = vadd.f32 %v2267_v18, %v2211_v7  ;;  %v2339_v4 = vpack.c.bf16 %v2329_v19, %v2328_v8  ;;  %v2180_v29 = vadd.f32 %v2164_v58, %v2083_v25  ;;  %v2695_v44 = vunpack.c.h.bf16 %v2752_v52  ;;  %v2756_v19 = vld [vmem:[%s3158_s21 + $0x28] sm:$0xff]  }
 0x1d0   : > { %v2298_v22 = vadd.f32 %v4104_v32, %v2282_v2  ;;  %v2181_v50 = vadd.f32 %v2164_v58, %v2084_v59  ;;  %v2691_v51 = vunpack.c.h.bf16 %v2689_v14  ;;  %v2702_v26 = vunpack.c.l.bf16 %v2754_v23  ;;  %v2755_v2 = vld [vmem:[%s3158_s21 + $0x20] sm:$0xff]  }
 0x1d1   : > { %v2299_v54 = vadd.f32 %v4104_v32, %v2283_v0  ;;  %2916 = vmatmul.mubr.bf16.gmra.mrb[24].mxu1 %v2339_v4  ;;  %v2212_v28 = vadd.f32 %v2196_v40, %v2180_v29  ;;  %v2698_v39 = vunpack.c.l.bf16 %v2753_v16  ;;  %v2703_v58 = vunpack.c.h.bf16 %v2754_v23 }
 0x1d2   : > { %v2314_v49 = vmax.f32 %v2298_v22, 0.0  ;;  %v2213_v42 = vadd.f32 %v2196_v40, %v2181_v50  ;;  %v2699_v36 = vunpack.c.h.bf16 %v2753_v16  ;;  %v2710_v25 = vunpack.c.l.bf16 %v2756_v19 }
 0x1d3   : > { %v2315_v62 = vmax.f32 %v2299_v54, 0.0  ;;  %v2284_v43 = vadd.f32 %v2268_v48, %v2212_v28  ;;  %v2706_v0 = vunpack.c.l.bf16 %v2755_v2  ;;  %v2711_v22 = vunpack.c.h.bf16 %v2756_v19 }
 0x1d4   : > { %v2330_v15 = vmin.f32 %v2314_v49, 6.0  ;;  %v2285_v10 = vadd.f32 %v2268_v48, %v2213_v42  ;;  %v2707_v54 = vunpack.c.h.bf16 %v2755_v2 }
 0x1d5   : > { %v2331_v38 = vmin.f32 %v2315_v62, 6.0  ;;  %v2300_v46 = vadd.f32 %v4104_v32, %v2284_v43 }
 0x1d6   : > { %v2301_v11 = vadd.f32 %v4104_v32, %v2285_v10 }
 0x1d7   : > { %v2340_v20 = vpack.c.bf16 %v2331_v38, %v2330_v15  ;;  %v2316_v37 = vmax.f32 %v2300_v46, 0.0  ;;  %v2760_v38 = vld [vmem:[%s3158_s21 + $0x48] sm:$0xff]   ;;  %v2759_v46 = vld [vmem:[%s3158_s21 + $0x40] sm:$0xff]  }
 0x1d8   : > { %v2317_v63 = vmax.f32 %v2301_v11, 0.0  ;;  %v2758_v11 = vld [vmem:[%s3158_s21 + $0x38] sm:$0xff]   ;;  %v2727_v52 = vunpack.c.h.bf16 %v2760_v38 }
 0x1d9   : > { %2919 = vmatprep.mubr.bf16.mxu1 %v2340_v20  ;;  %v2332_v33 = vmin.f32 %v2316_v37, 6.0  ;;  %v2726_v20 = vunpack.c.l.bf16 %v2760_v38  ;;  %v2718_v14 = vunpack.c.l.bf16 %v2758_v11 }
 0x1da   : > { %v2333_v34 = vmin.f32 %v2317_v63, 6.0  ;;  %v2757_v63 = vld [vmem:[%s3158_s21 + $0x30] sm:$0xff]  }
 0x1db   : > { %v2715_v23 = vunpack.c.h.bf16 %v2757_v63 }
 0x1dc   : > { %v2341_v47 = vpack.c.bf16 %v2333_v34, %v2332_v33  ;;  %v2722_v33 = vunpack.c.l.bf16 %v2759_v46 }
 0x1de   : > { %2920 = vmatmul.mubr.bf16.gmra.mrb[28].mxu1 %v2341_v47 }
 0x23a   : > { %v2877_v32 = vpop.f32.mrb[16].mxu0 }
 0x23b   : > { %v1582_v30 = vadd.f32 %v2877_v32, %v4621_v9  ;;  %v1573_v12 = vpop.f32.mrb[17].mxu0 }
 0x23c   : > { %v1574_v53 = vadd.f32 %v4621_v9, %v1573_v12  ;;  %v2878_v61 = vpop.f32.mrb[18].mxu0 }
 0x23d   : > { %v1670_v6 = vadd.f32 %v2694_v45, %v1582_v30  ;;  %v1585_v27 = vadd.f32 %v2878_v61, %v4621_v9  ;;  %v1576_v57 = vpop.f32.mrb[19].mxu0 }
 0x23e   : > { %v1668_v56 = vadd.f32 %v2690_v1, %v1574_v53  ;;  %v1577_v17 = vadd.f32 %v4621_v9, %v1576_v57  ;;  %v2723_v1 = vunpack.c.h.bf16 %v2759_v46  ;;  %v2719_v57 = vunpack.c.h.bf16 %v2758_v11 }
 0x23f   : > { %1686 = vst.msk [vmem:[%s4629_s29 + $0x10] sm:$0xff] %vm381_vm0, %v1670_v6  ;;  %v1671_v60 = vadd.f32 %v2695_v44, %v1585_v27  ;;  %v2714_v44 = vunpack.c.l.bf16 %v2757_v63 }
 0x240   : > { %1684 = vst.msk [vmem:[%s4629_s29] sm:$0xff] %vm381_vm0, %v1668_v56  ;;  %v1669_v55 = vadd.f32 %v2691_v51, %v1577_v17 }
 0x241   : > { %1687 = vst.msk [vmem:[%s4629_s29 + $0x18] sm:$0xff] %vm381_vm0, %v1671_v60 }
 0x242   : > { %1685 = vst.msk [vmem:[%s4629_s29 + $0x8] sm:$0xff] %vm381_vm0, %v1669_v55 }
 0x250   : > { %v2881_v35 = vpop.f32.mrb[20].mxu0 }
 0x251   : > { %v1598_v18 = vadd.f32 %v2881_v35, %v4621_v9  ;;  %v1589_v5 = vpop.f32.mrb[21].mxu0 }
 0x252   : > { %v1590_v3 = vadd.f32 %v4621_v9, %v1589_v5  ;;  %v2882_v21 = vpop.f32.mrb[22].mxu0 }
 0x253   : > { %v1674_v31 = vadd.f32 %v2702_v26, %v1598_v18  ;;  %v1601_v41 = vadd.f32 %v2882_v21, %v4621_v9  ;;  %v1592_v24 = vpop.f32.mrb[23].mxu0  ;;  %v2762_v21 = vld [vmem:[%s3158_s21 + $0x58] sm:$0xff]  }
 0x254   : > { %v1672_v13 = vadd.f32 %v2698_v39, %v1590_v3  ;;  %v1593_v8 = vadd.f32 %v4621_v9, %v1592_v24 }
 0x255   : > { %1690 = vst.msk [vmem:[%s4629_s29 + $0x30] sm:$0xff] %vm381_vm0, %v1674_v31  ;;  %v1675_v7 = vadd.f32 %v2703_v58, %v1601_v41  ;;  %v2734_v31 = vunpack.c.l.bf16 %v2762_v21 }
 0x256   : > { %1688 = vst.msk [vmem:[%s4629_s29 + $0x20] sm:$0xff] %vm381_vm0, %v1672_v13  ;;  %v1673_v40 = vadd.f32 %v2699_v36, %v1593_v8  ;;  %v2761_v36 = vld [vmem:[%s3158_s21 + $0x50] sm:$0xff]  }
 0x257   : > { %1691 = vst.msk [vmem:[%s4629_s29 + $0x38] sm:$0xff] %vm381_vm0, %v1675_v7  ;;  %v2730_v24 = vunpack.c.l.bf16 %v2761_v36  ;;  %v2735_v7 = vunpack.c.h.bf16 %v2762_v21  ;;  %v2731_v2 = vunpack.c.h.bf16 %v2761_v36 }
 0x258   : > { %1689 = vst.msk [vmem:[%s4629_s29 + $0x28] sm:$0xff] %vm381_vm0, %v1673_v40 }
 0x262   : > { %v2885_v59 = vpop.f32.mrb[24].mxu0 }
 0x263   : > { %v1614_v48 = vadd.f32 %v2885_v59, %v4621_v9  ;;  %v1605_v4 = vpop.f32.mrb[25].mxu0 }
 0x264   : > { %v1606_v29 = vadd.f32 %v4621_v9, %v1605_v4  ;;  %v2886_v50 = vpop.f32.mrb[26].mxu0 }
 0x265   : > { %v1678_v49 = vadd.f32 %v2710_v25, %v1614_v48  ;;  %v1617_v28 = vadd.f32 %v2886_v50, %v4621_v9  ;;  %v1608_v42 = vpop.f32.mrb[27].mxu0  ;;  %v2764_v50 = vld [vmem:[%s3158_s21 + $0x68] sm:$0xff]  }
 0x266   : > { %v1676_v62 = vadd.f32 %v2706_v0, %v1606_v29  ;;  %v1609_v15 = vadd.f32 %v4621_v9, %v1608_v42 }
 0x267   : > { %1694 = vst.msk [vmem:[%s4629_s29 + $0x50] sm:$0xff] %vm381_vm0, %v1678_v49  ;;  %v1679_v43 = vadd.f32 %v2711_v22, %v1617_v28  ;;  %v2742_v49 = vunpack.c.l.bf16 %v2764_v50 }
 0x268   : > { %1692 = vst.msk [vmem:[%s4629_s29 + $0x40] sm:$0xff] %vm381_vm0, %v1676_v62  ;;  %v1677_v10 = vadd.f32 %v2707_v54, %v1609_v15  ;;  %v2763_v54 = vld [vmem:[%s3158_s21 + $0x60] sm:$0xff]  }
 0x269   : > { %1695 = vst.msk [vmem:[%s4629_s29 + $0x58] sm:$0xff] %vm381_vm0, %v1679_v43  ;;  %v2738_v42 = vunpack.c.l.bf16 %v2763_v54  ;;  %v2743_v43 = vunpack.c.h.bf16 %v2764_v50  ;;  %v2739_v46 = vunpack.c.h.bf16 %v2763_v54 }
 0x26a   : > { %1693 = vst.msk [vmem:[%s4629_s29 + $0x48] sm:$0xff] %vm381_vm0, %v1677_v10 }
 0x27a   : > { %v2909_v37 = vpop.f32.mrb[16].mxu1 }
 0x27b   : > { %v2385_v34 = vadd.f32 %v2909_v37, %v4621_v9  ;;  %v2376_v47 = vpop.f32.mrb[17].mxu1 }
 0x27c   : > { %v2377_v45 = vadd.f32 %v4621_v9, %v2376_v47  ;;  %v2910_v32 = vpop.f32.mrb[18].mxu1 }
 0x27d   : > { %v2473_v12 = vadd.f32 %v2726_v20, %v2385_v34  ;;  %v2388_v53 = vadd.f32 %v2910_v32, %v4621_v9  ;;  %v2379_v61 = vpop.f32.mrb[19].mxu1 }
 0x27e   : > { %v2889_v30 = vpop.f32.mrb[28].mxu0  ;;  %v2471_v27 = vadd.f32 %v2722_v33, %v2377_v45  ;;  %v2380_v56 = vadd.f32 %v4621_v9, %v2379_v61 }
 0x27f   : > { %v1630_v51 = vadd.f32 %v2889_v30, %v4621_v9  ;;  %v1621_v6 = vpop.f32.mrb[29].mxu0  ;;  %2667 = vst.msk [vmem:[%s4629_s29 + $0x90] sm:$0xff] %vm381_vm0, %v2473_v12  ;;  %v2474_v55 = vadd.f32 %v2727_v52, %v2388_v53  ;;  %v2766_v52 = vld [vmem:[%s3158_s21 + $0x78] sm:$0xff]  }
 0x280   : > { %v1622_v17 = vadd.f32 %v4621_v9, %v1621_v6  ;;  %v2890_v60 = vpop.f32.mrb[30].mxu0  ;;  %2665 = vst.msk [vmem:[%s4629_s29 + $0x80] sm:$0xff] %vm381_vm0, %v2471_v27  ;;  %v2472_v39 = vadd.f32 %v2723_v1, %v2380_v56  ;;  %v2750_v45 = vunpack.c.l.bf16 %v2766_v52 }
 0x281   : > { %v1682_v16 = vadd.f32 %v2718_v14, %v1630_v51  ;;  %v1633_v26 = vadd.f32 %v2890_v60, %v4621_v9  ;;  %v1624_v35 = vpop.f32.mrb[31].mxu0  ;;  %2668 = vst.msk [vmem:[%s4629_s29 + $0x98] sm:$0xff] %vm381_vm0, %v2474_v55  ;;  %v2765_v14 = vld [vmem:[%s3158_s21 + $0x70] sm:$0xff]  }
 0x282   : > { %v1680_v18 = vadd.f32 %v2714_v44, %v1622_v17  ;;  %v1625_v5 = vadd.f32 %v4621_v9, %v1624_v35  ;;  %2666 = vst.msk [vmem:[%s4629_s29 + $0x88] sm:$0xff] %vm381_vm0, %v2472_v39  ;;  %v2746_v1 = vunpack.c.l.bf16 %v2765_v14  ;;  %v2751_v44 = vunpack.c.h.bf16 %v2766_v52 }
 0x283   : > { %1698 = vst.msk [vmem:[%s4629_s29 + $0x70] sm:$0xff] %vm381_vm0, %v1682_v16  ;;  %v1683_v58 = vadd.f32 %v2719_v57, %v1633_v26  ;;  %v2747_v51 = vunpack.c.h.bf16 %v2765_v14 }
 0x284   : > { %1696 = vst.msk [vmem:[%s4629_s29 + $0x60] sm:$0xff] %vm381_vm0, %v1680_v18  ;;  %v1681_v3 = vadd.f32 %v2715_v23, %v1625_v5 }
 0x285   : > { %1699 = vst.msk [vmem:[%s4629_s29 + $0x78] sm:$0xff] %vm381_vm0, %v1683_v58 }
 0x286   : > { %1697 = vst.msk [vmem:[%s4629_s29 + $0x68] sm:$0xff] %vm381_vm0, %v1681_v3 }
 0x293   : > { %v2913_v41 = vpop.f32.mrb[20].mxu1 }
 0x294   : > { %v2401_v13 = vadd.f32 %v2913_v41, %v4621_v9  ;;  %v2392_v8 = vpop.f32.mrb[21].mxu1 }
 0x295   : > { %v2393_v40 = vadd.f32 %v4621_v9, %v2392_v8  ;;  %v2914_v19 = vpop.f32.mrb[22].mxu1 }
 0x296   : > { %v2477_v25 = vadd.f32 %v2734_v31, %v2401_v13  ;;  %v2404_v59 = vadd.f32 %v2914_v19, %v4621_v9  ;;  %v2395_v0 = vpop.f32.mrb[23].mxu1 }
 0x297   : > { %v2475_v48 = vadd.f32 %v2730_v24, %v2393_v40  ;;  %v2396_v4 = vadd.f32 %v4621_v9, %v2395_v0 }
 0x298   : > { %2671 = vst.msk [vmem:[%s4629_s29 + $0xb0] sm:$0xff] %vm381_vm0, %v2477_v25  ;;  %v2478_v22 = vadd.f32 %v2735_v7, %v2404_v59 }
 0x299   : > { %2669 = vst.msk [vmem:[%s4629_s29 + $0xa0] sm:$0xff] %vm381_vm0, %v2475_v48  ;;  %v2476_v29 = vadd.f32 %v2731_v2, %v2396_v4 }
 0x29a   : > { %2672 = vst.msk [vmem:[%s4629_s29 + $0xb8] sm:$0xff] %vm381_vm0, %v2478_v22 }
 0x29b   : > { %2670 = vst.msk [vmem:[%s4629_s29 + $0xa8] sm:$0xff] %vm381_vm0, %v2476_v29 }
 0x2a4   : > { %v2917_v28 = vpop.f32.mrb[24].mxu1 }
 0x2a5   : > { %v2417_v62 = vadd.f32 %v2917_v28, %v4621_v9  ;;  %v2408_v15 = vpop.f32.mrb[25].mxu1 }
 0x2a6   : > { %v2409_v10 = vadd.f32 %v4621_v9, %v2408_v15  ;;  %v2918_v38 = vpop.f32.mrb[26].mxu1 }
 0x2a7   : > { %v2481_v11 = vadd.f32 %v2742_v49, %v2417_v62  ;;  %v2420_v20 = vadd.f32 %v2918_v38, %v4621_v9  ;;  %v2411_v37 = vpop.f32.mrb[27].mxu1 }
 0x2a8   : > { %v2479_v63 = vadd.f32 %v2738_v42, %v2409_v10  ;;  %v2412_v33 = vadd.f32 %v4621_v9, %v2411_v37 }
 0x2a9   : > { %2675 = vst.msk [vmem:[%s4629_s29 + $0xd0] sm:$0xff] %vm381_vm0, %v2481_v11  ;;  %v2482_v34 = vadd.f32 %v2743_v43, %v2420_v20 }
 0x2aa   : > { %2673 = vst.msk [vmem:[%s4629_s29 + $0xc0] sm:$0xff] %vm381_vm0, %v2479_v63  ;;  %v2480_v47 = vadd.f32 %v2739_v46, %v2412_v33 }
 0x2ab   : > { %2676 = vst.msk [vmem:[%s4629_s29 + $0xd8] sm:$0xff] %vm381_vm0, %v2482_v34 }
 0x2ac   : > { %2674 = vst.msk [vmem:[%s4629_s29 + $0xc8] sm:$0xff] %vm381_vm0, %v2480_v47 }
 0x2b1   : > { %v2921_v32 = vpop.f32.mrb[28].mxu1 }
 0x2b2   : > { %v2433_v30 = vadd.f32 %v2921_v32, %v4621_v9  ;;  %v2424_v12 = vpop.f32.mrb[29].mxu1 }
 0x2b3   : > { %v2425_v53 = vadd.f32 %v4621_v9, %v2424_v12  ;;  %v2922_v61 = vpop.f32.mrb[30].mxu1 }
 0x2b4   : > { %v2485_v6 = vadd.f32 %v2750_v45, %v2433_v30  ;;  %v2436_v27 = vadd.f32 %v2922_v61, %v4621_v9  ;;  %v2427_v57 = vpop.f32.mrb[31].mxu1 }
 0x2b5   : > { %v2483_v56 = vadd.f32 %v2746_v1, %v2425_v53  ;;  %v2428_v17 = vadd.f32 %v4621_v9, %v2427_v57 }
 0x2b6   : > { %2679 = vst.msk [vmem:[%s4629_s29 + $0xf0] sm:$0xff] %vm381_vm0, %v2485_v6  ;;  %v2486_v60 = vadd.f32 %v2751_v44, %v2436_v27 }
 0x2b7   : > { %2677 = vst.msk [vmem:[%s4629_s29 + $0xe0] sm:$0xff] %vm381_vm0, %v2483_v56  ;;  %v2484_v55 = vadd.f32 %v2747_v51, %v2428_v17 }
 0x2b8   : > { %2680 = vst.msk [vmem:[%s4629_s29 + $0xf8] sm:$0xff] %vm381_vm0, %v2486_v60 }
 0x2b9   : > { %2678 = vst.msk [vmem:[%s4629_s29 + $0xe8] sm:$0xff] %vm381_vm0, %v2484_v55 }
 0x2ba   : > { %3004 = shalt.err (!%p3001_p3)
}
 0x2bb   : > { %s3005_s19 = scalar_lea.hbm %s4736_s14, 4096  ;;  %s3009_s23 = scalar_lea.hbm %s4796_s7, 8192 }
 0x2bc   : > { %p3006_p4 = scmp.ne.s32.totalorder %s4736_s14, %s3005_s19  ;;  %p3010_p9 = scmp.lt.u32.totalorder %s4736_s14, %s4796_s7 }
 0x2bd   : > { %p3011_p10 = scmp.lt.u32.totalorder %s3009_s23, %s3005_s19  ;;  %p3013_p12 = scmp.lt.u32.totalorder %s3005_s19, %s4736_s14 }
 0x2be   : > { %p3007_p7 = pnand %p3006_p4, %p3137_p5 }
 0x2bf   : > { %p3012_p11 = por %p3011_p10, %p3010_p9 }
 0x2c0   : > { %p3008_p8 = pneg %p3007_p7 }
 0x2c1   : > { %p3014_p13 = por %p3013_p12, %p3012_p11 }
 0x2c3   : > { %p3015_p0 = pnand %p3014_p13, %p3008_p8 }
 0x2c5   : > { %3018 = shalt.err (!%p3015_p0)
}
 0x2c6   : > { %s3057_s21 = smov 128   ;;  %s3058_s13 = smov 8  }
 0x2c7   : > { %2923 = dma.vmem_to_hbm [thread:$0]  (%p3137_p5), %s4738_s9, 4096, %s4736_s14, %s4748_s28, %s3057_s21, %s3057_s21, %s3058_s13  }
 0x2c8 PF: > { %p2929_p1 = scmp.ge.s32.totalorder %s3053_s27, 2  ;;  %s2533_s15 = sand.u32 1, %s3041_s24  }
 0x2c9   : > { %s2534_s16 = scalar_lea.sflag [#allocation4], %s2533_s15 }
 0x2ca   : > { %p2926_p2 = pnand %p2929_p1, %p3141_p6 }
 0x2cc   : > { %3036 = dma.done.wait (!%p2926_p2), %s2534_s16, 4096  }
 0x2cd   : > { %3038 = vsyncadd (!%p2926_p2), %s2534_s16, 4294963200  ;;  %p17_p3 = scmp.ge.s32.totalorder %s3124_s30, 4   ;;  %s5135_s24 = smov %s3045_s25 }
 0x2ce   : > { %s5136_s25 = smov %s3049_s26  ;;  %s5137_s26 = smov %s3135_s10 }
 0x2cf   : > { %s5138_s27 = smov %s3124_s30  ;;  %19 = sbr.rel (!%p17_p3) target bundleno = 3 (0x3), region = 91 }
 0x2d6   :  { %2539 = vsyncpa [#allocation4], 1 }
 0x2d7   :  { %2541 = vsyncpa [#allocation4 + $0x1], 1 }

</bundles_post_ra>
